<compile_context>
chip_gen: v6e
topology: v6e:2x2x1
jax: 0.10.0
libtpu: 0.0.40
codegen_flags: <defaults>
</compile_context>

<pallas_src>
import math
import functools

import jax
import jax.numpy as jnp
from jax.experimental import pallas as pl
from jax.experimental.pallas import tpu as pltpu


# ----------------------------- math helpers --------------------------------

def _round_up(a, m):
    return ((a + m - 1) // m) * m


def _gelu_exact(x):
    # exact (erf) GELU, matching nn.GELU() default
    return 0.5 * x * (1.0 + jax.lax.erf(x * (1.0 / math.sqrt(2.0))))


def _layernorm(x, g, b, eps=1e-5):
    mu = jnp.mean(x, axis=-1, keepdims=True)
    var = jnp.mean((x - mu) ** 2, axis=-1, keepdims=True)
    return (x - mu) * jax.lax.rsqrt(var + eps) * g + b


# ------------------------------ Pallas kernel -------------------------------

def semg_transformer_kernel(
    x_ref,      # (Bt*Tp, CP) bf16  patchified input; CLS row / pad rows are 0
    w_in_ref,   # (CP, D)     bf16
    wsq_ref,    # (5D, D)     bf16  [wk; wv; wq*scale; wo; head_sel]
    w1_ref,     # (D, FF)     bf16
    w2_ref,     # (FF, D)     bf16
    wh_ref,     # (D, 128)    bf16  (mlp_head, zero-padded to 128 lanes)
    add_ref,    # (Tp, D)     f32   row0=cls+pos0, rows 1..S=b_in+pos, rest 0
    mask_ref,   # (Tp, D)     f32   0 for valid tokens, -1e30 for pad rows
    vec_ref,    # (9, D)      f32   [bk,bv,bq*scale,bo,b2,ln1_g,ln1_b,ln2_g,ln2_b]
    b1_ref,     # (1, FF)     f32
    bh_ref,     # (1, 128)    f32
    o_ref,      # (Bt, 128)   f32   logits (lane-padded)
    *, t_pad,
):
    N = x_ref.shape[0]
    D = w_in_ref.shape[1]
    Bt = N // t_pad
    bf16 = jnp.bfloat16

    bk, bv, bq = vec_ref[0:1, :], vec_ref[1:2, :], vec_ref[2:3, :]
    bo, b2 = vec_ref[3:4, :], vec_ref[4:5, :]
    ln1_g, ln1_b = vec_ref[5:6, :], vec_ref[6:7, :]
    ln2_g, ln2_b = vec_ref[7:8, :], vec_ref[8:9, :]

    w_k = wsq_ref[0 * D:1 * D, :]
    w_v = wsq_ref[1 * D:2 * D, :]
    w_q = wsq_ref[2 * D:3 * D, :]
    w_o = wsq_ref[3 * D:4 * D, :]
    hsel = wsq_ref[4 * D:5 * D, :]          # block-diag "same head" ones

    # ---- input projection + CLS / positional additive slab (broadcast) ----
    h = jnp.dot(x_ref[...], w_in_ref[...], preferred_element_type=jnp.float32)
    tok = h.reshape(Bt, t_pad, D) + add_ref[...]            # (Bt, Tp, D) f32

    # ---- attention: queries restricted to CLS rows (1 layer, CLS readout) --
    xn = _layernorm(tok, ln1_g, ln1_b)                      # (Bt, Tp, D)
    xn2 = xn.reshape(N, D).astype(bf16)
    k = jnp.dot(xn2, w_k, preferred_element_type=jnp.float32) + bk
    v = jnp.dot(xn2, w_v, preferred_element_type=jnp.float32) + bv
    q = jnp.dot(xn[:, 0, :].astype(bf16), w_q,
                preferred_element_type=jnp.float32) + bq    # (Bt, D), 1/sqrt(dh) folded

    k3 = k.reshape(Bt, t_pad, D)
    v3 = v.reshape(Bt, t_pad, D)
    # per-head scores in the expanded (rows, D) layout:
    #   s[b, t, d] = sum_{d' in head(d)} q[b, d'] * k[b, t, d']
    prod = (q[:, None, :] * k3).reshape(N, D).astype(bf16)
    s = jnp.dot(prod, hsel,
                preferred_element_type=jnp.float32).reshape(Bt, t_pad, D)
    s = s + mask_ref[...]                                   # mask padded keys
    m = jnp.max(s, axis=1, keepdims=True)                   # per (example, head)
    p = jnp.exp(s - m)                                      # unnormalized probs
    denom = jnp.sum(p, axis=1)                              # (Bt, D)
    ctx = jnp.sum(p * v3, axis=1) / denom                   # (Bt, D)
    attn = jnp.dot(ctx.astype(bf16), w_o,
                   preferred_element_type=jnp.float32) + bo

    x1 = tok[:, 0, :] + attn                                # residual, CLS rows

    # ---- feed-forward block + classification head (CLS rows only) ----
    xf = _layernorm(x1, ln2_g, ln2_b)
    ff = jnp.dot(xf.astype(bf16), w1_ref[...],
                 preferred_element_type=jnp.float32) + b1_ref[...]
    ff = _gelu_exact(ff)
    ff = jnp.dot(ff.astype(bf16), w2_ref[...],
                 preferred_element_type=jnp.float32) + b2
    x2 = x1 + ff

    o_ref[...] = jnp.dot(x2.astype(bf16), wh_ref[...],
                         preferred_element_type=jnp.float32) + bh_ref[...]


# ------------------------------ JAX wrapper ---------------------------------

def _patchify(x, patch_size):
    B, C, L = x.shape
    S = L // patch_size
    x = x[:, :, : S * patch_size]
    return x.reshape(B, C, S, patch_size).transpose(0, 2, 1, 3).reshape(
        B, S, C * patch_size)


def semg_transformer_forward(x, params, *, patch_size, nhead, block_b=32):
    xp = _patchify(x, patch_size)                            # (B, S, C*P)
    B, S, CP = xp.shape
    D = params["w_in"].shape[1]
    FF = params["w1"].shape[1]
    T = S + 1
    assert params["pos"].shape[0] == T, "pos embedding / seq_len mismatch"
    Tp = _round_up(T, 8)
    dh = D // nhead

    # --- batch blocking: 8-aligned sublanes, >=2 grid steps when possible ---
    Bt = _round_up(min(B, block_b), 8)
    Bpad = _round_up(B, Bt)
    if Bpad // Bt < 2 and Bpad >= 16:
        # split the batch axis so the "parallel" grid can use both v7x cores
        Bt = max(8, _round_up(pl.cdiv(Bpad, 2), 8))
        Bpad = _round_up(B, Bt)

    # pad batch + tokens (row 0 reserved for CLS, tail rows are key padding)
    xpad = jnp.zeros((Bpad, Tp, CP), jnp.float32)
    xpad = xpad.at[:B, 1:T, :].set(xp)
    xflat = xpad.reshape(Bpad * Tp, CP).astype(jnp.bfloat16)

    # packed square weights; attention scale 1/sqrt(dh) folded into wq / bq
    scale = 1.0 / math.sqrt(dh)
    lane = jnp.arange(D)
    head_sel = (lane[:, None] // dh == lane[None, :] // dh).astype(jnp.float32)
    wsq = jnp.concatenate(
        [params["wk"], params["wv"], params["wq"] * scale, params["wo"],
         head_sel], axis=0).astype(jnp.bfloat16)             # (5D, D)

    vec9 = jnp.concatenate(
        [params["bk"], params["bv"], params["bq"] * scale, params["bo"],
         params["b2"], params["ln1_g"], params["ln1_b"],
         params["ln2_g"], params["ln2_b"]], axis=0)          # (9, D)

    # additive slab (Tp, D): row0 = cls+pos0, rows 1..S = b_in+pos, rest 0
    add = jnp.zeros((Tp, D), jnp.float32)
    add = add.at[0, :].set(params["cls"][0] + params["pos"][0])
    add = add.at[1:T, :].set(params["b_in"] + params["pos"][1:T])

    # key-padding bias (Tp, D): 0 for valid tokens, -1e30 for pad rows
    mask = jnp.where(jnp.arange(Tp)[:, None] < T, 0.0, -1e30)
    mask = jnp.broadcast_to(mask, (Tp, D)).astype(jnp.float32)

    wh_pad = jnp.zeros((D, 128), jnp.float32).at[:, :2].set(
        params["wh"]).astype(jnp.bfloat16)
    bh_pad = jnp.zeros((1, 128), jnp.float32).at[:, :2].set(params["bh"])

    w_in = params["w_in"].astype(jnp.bfloat16)
    w1 = params["w1"].astype(jnp.bfloat16)
    w2 = params["w2"].astype(jnp.bfloat16)
    b1 = params["b1"]

    weights = [w_in, wsq, w1, w2, wh_pad, add, mask, vec9, b1, bh_pad]

    def full_spec(a):
        return pl.BlockSpec(a.shape, lambda b, _nd=a.ndim: (0,) * _nd)

    # advisory cost estimate for XLA scheduling
    flops = int(Bpad * Tp * (2 * CP * D + 6 * D * D)
                + Bpad * (4 * D * D + 4 * D * FF + 2 * D * 128))
    transcend = int(Bpad * Tp * D + Bpad * FF)
    bytes_acc = int(xflat.size * 2
                    + sum(int(w.size) * w.dtype.itemsize for w in weights)
                    + Bpad * 128 * 4)

    out = pl.pallas_call(
        functools.partial(semg_transformer_kernel, t_pad=Tp),
        out_shape=jax.ShapeDtypeStruct((Bpad, 128), jnp.float32),
        grid=(Bpad // Bt,),
        in_specs=[pl.BlockSpec((Bt * Tp, CP), lambda b: (b, 0))]
        + [full_spec(w) for w in weights],
        out_specs=pl.BlockSpec((Bt, 128), lambda b: (b, 0)),
        compiler_params=pltpu.CompilerParams(
            dimension_semantics=("parallel",),
            vmem_limit_bytes=48 * 1024 * 1024),
        cost_estimate=pl.CostEstimate(
            flops=flops, transcendentals=transcend, bytes_accessed=bytes_acc),
    )(xflat, *weights)
    return out[:B, :2]


# ----------------------- parameter init (deterministic) ---------------------

def init_params(key, patch_size, d_model, nhead, dim_feedforward, seq_len,
                in_channels=4):
    D = d_model
    ks = jax.random.split(key, 20)

    def w(k, shape, scale=0.02):
        return (scale * jax.random.normal(k, shape)).astype(jnp.float32)

    return {
        "w_in": w(ks[0], (in_channels * patch_size, D)),
        "b_in": w(ks[1], (1, D)),
        "cls": jax.random.uniform(ks[2], (1, D), jnp.float32),      # torch.rand
        "pos": jax.random.normal(ks[3], (seq_len + 1, D), jnp.float32),
        "wq": w(ks[4], (D, D)), "bq": w(ks[5], (1, D)),
        "wk": w(ks[6], (D, D)), "bk": w(ks[7], (1, D)),
        "wv": w(ks[8], (D, D)), "bv": w(ks[9], (1, D)),
        "wo": w(ks[10], (D, D)), "bo": w(ks[11], (1, D)),
        "ln1_g": jnp.ones((1, D), jnp.float32),
        "ln1_b": jnp.zeros((1, D), jnp.float32),
        "ln2_g": jnp.ones((1, D), jnp.float32),
        "ln2_b": jnp.zeros((1, D), jnp.float32),
        "w1": w(ks[12], (D, dim_feedforward)), "b1": w(ks[13], (1, dim_feedforward)),
        "w2": w(ks[14], (dim_feedforward, D)), "b2": w(ks[15], (1, D)),
        "wh": w(ks[16], (D, 2)), "bh": w(ks[17], (1, 2)),
    }


# --------------------------- pure-JAX reference ------------------------------

def reference_forward(x, params, *, patch_size, nhead):
    xp = _patchify(x, patch_size)
    B, S, _ = xp.shape
    D = params["w_in"].shape[1]
    dh = D // nhead
    T = S + 1

    h = xp @ params["w_in"] + params["b_in"]
    cls = jnp.broadcast_to(params["cls"][None, :, :], (B, 1, D))
    t = jnp.concatenate([cls, h], axis=1) + params["pos"][None]

    xn = _layernorm(t, params["ln1_g"], params["ln1_b"])
    q = xn @ params["wq"] + params["bq"]
    k = xn @ params["wk"] + params["bk"]
    v = xn @ params["wv"] + params["bv"]

    def split(a):
        return a.reshape(B, T, nhead, dh).transpose(0, 2, 1, 3)

    qh, kh, vh = split(q), split(k), split(v)
    s = jnp.einsum("bhqd,bhkd->bhqk", qh, kh) / math.sqrt(dh)
    p = jax.nn.softmax(s, axis=-1)
    a = jnp.einsum("bhqk,bhkd->bhqd", p, vh).transpose(0, 2, 1, 3).reshape(B, T, D)
    a = a @ params["wo"] + params["bo"]
    x1 = t + a

    xn2 = _layernorm(x1, params["ln2_g"], params["ln2_b"])
    ff = _gelu_exact(xn2 @ params["w1"] + params["b1"]) @ params["w2"] + params["b2"]
    x2 = x1 + ff
    return x2[:, 0, :] @ params["wh"] + params["bh"]


# ---------------------------------- main -------------------------------------

if __name__ == "__main__":
    # Small shapes consistent with the module's forward:
    #   x: (B, 4, L), patch_size=16 -> seq_len = L//16 = 8, d_model=64,
    #   nhead=4, dim_feedforward=128, num_layers=1.
    B, C, L = 2, 4, 133              # 133 -> cropped to 128 inside the wrapper
    patch_size, d_model, nhead, dim_feedforward = 16, 64, 4, 128
    seq_len = L // patch_size        # original module uses 4000 // patch_size

    key = jax.random.PRNGKey(0)
    kx, kp = jax.random.split(key)
    x = jax.random.normal(kx, (B, C, L), jnp.float32)
    params = init_params(kp, patch_size, d_model, nhead, dim_feedforward, seq_len)

    out = semg_transformer_forward(x, params, patch_size=patch_size, nhead=nhead)
    out = jax.block_until_ready(out)

    ref = reference_forward(x, params, patch_size=patch_size, nhead=nhead)
    ref = jax.block_until_ready(ref)

    assert out.shape == (B, 2), out.shape
    assert jnp.allclose(out, ref, atol=2e-2, rtol=2e-2), (out, ref)
    print("KERNEL_OK")
</pallas_src>

<mosaic_0001>
module attributes {stable_mosaic.version = 11 : i64} {
  func.func @semg_transformer_kernel(%arg0: i32, %arg1: memref<128x64xbf16, #tpu.memory_space<vmem>>, %arg2: memref<64x64xbf16, #tpu.memory_space<vmem>>, %arg3: memref<320x64xbf16, #tpu.memory_space<vmem>>, %arg4: memref<64x128xbf16, #tpu.memory_space<vmem>>, %arg5: memref<128x64xbf16, #tpu.memory_space<vmem>>, %arg6: memref<64x128xbf16, #tpu.memory_space<vmem>>, %arg7: memref<16x64xf32, #tpu.memory_space<vmem>>, %arg8: memref<16x64xf32, #tpu.memory_space<vmem>>, %arg9: memref<9x64xf32, #tpu.memory_space<vmem>>, %arg10: memref<1x128xf32, #tpu.memory_space<vmem>>, %arg11: memref<1x128xf32, #tpu.memory_space<vmem>>, %arg12: memref<8x128xf32, #tpu.memory_space<vmem>>) attributes {dimension_semantics = [#tpu.dimension_semantics<parallel>], iteration_bounds = array<i64: 1>, scalar_prefetch = 0 : i64, scratch_operands = 0 : i64, tpu.core_type = #tpu.core_type<tc>, window_params = [{transform_indices = @transform_0, window_bounds = array<i64: 128, 64>}, {pipeline_mode = #tpu.pipeline_mode<synchronous>, transform_indices = @transform_1, window_bounds = array<i64: 64, 64>}, {pipeline_mode = #tpu.pipeline_mode<synchronous>, transform_indices = @transform_2, window_bounds = array<i64: 320, 64>}, {pipeline_mode = #tpu.pipeline_mode<synchronous>, transform_indices = @transform_3, window_bounds = array<i64: 64, 128>}, {pipeline_mode = #tpu.pipeline_mode<synchronous>, transform_indices = @transform_4, window_bounds = array<i64: 128, 64>}, {pipeline_mode = #tpu.pipeline_mode<synchronous>, transform_indices = @transform_5, window_bounds = array<i64: 64, 128>}, {pipeline_mode = #tpu.pipeline_mode<synchronous>, transform_indices = @transform_6, window_bounds = array<i64: 16, 64>}, {pipeline_mode = #tpu.pipeline_mode<synchronous>, transform_indices = @transform_7, window_bounds = array<i64: 16, 64>}, {pipeline_mode = #tpu.pipeline_mode<synchronous>, transform_indices = @transform_8, window_bounds = array<i64: 9, 64>}, {pipeline_mode = #tpu.pipeline_mode<synchronous>, transform_indices = @transform_9, window_bounds = array<i64: 1, 128>}, {pipeline_mode = #tpu.pipeline_mode<synchronous>, transform_indices = @transform_10, window_bounds = array<i64: 1, 128>}, {transform_indices = @transform_11, window_bounds = array<i64: 8, 128>}]} {
    %c0 = arith.constant 0 : index
    %c0_0 = arith.constant 0 : index
    %0 = vector.load %arg9[%c0, %c0_0] : memref<9x64xf32, #tpu.memory_space<vmem>>, vector<1x64xf32>
    %c1 = arith.constant 1 : index
    %c0_1 = arith.constant 0 : index
    %1 = vector.load %arg9[%c1, %c0_1] : memref<9x64xf32, #tpu.memory_space<vmem>>, vector<1x64xf32>
    %c2 = arith.constant 2 : index
    %c0_2 = arith.constant 0 : index
    %2 = vector.load %arg9[%c2, %c0_2] : memref<9x64xf32, #tpu.memory_space<vmem>>, vector<1x64xf32>
    %c3 = arith.constant 3 : index
    %c0_3 = arith.constant 0 : index
    %3 = vector.load %arg9[%c3, %c0_3] : memref<9x64xf32, #tpu.memory_space<vmem>>, vector<1x64xf32>
    %c4 = arith.constant 4 : index
    %c0_4 = arith.constant 0 : index
    %4 = vector.load %arg9[%c4, %c0_4] : memref<9x64xf32, #tpu.memory_space<vmem>>, vector<1x64xf32>
    %c5 = arith.constant 5 : index
    %c0_5 = arith.constant 0 : index
    %5 = vector.load %arg9[%c5, %c0_5] : memref<9x64xf32, #tpu.memory_space<vmem>>, vector<1x64xf32>
    %c6 = arith.constant 6 : index
    %c0_6 = arith.constant 0 : index
    %6 = vector.load %arg9[%c6, %c0_6] : memref<9x64xf32, #tpu.memory_space<vmem>>, vector<1x64xf32>
    %c7 = arith.constant 7 : index
    %c0_7 = arith.constant 0 : index
    %7 = vector.load %arg9[%c7, %c0_7] : memref<9x64xf32, #tpu.memory_space<vmem>>, vector<1x64xf32>
    %c8 = arith.constant 8 : index
    %c0_8 = arith.constant 0 : index
    %8 = vector.load %arg9[%c8, %c0_8] : memref<9x64xf32, #tpu.memory_space<vmem>>, vector<1x64xf32>
    %c0_9 = arith.constant 0 : index
    %c0_10 = arith.constant 0 : index
    %9 = vector.load %arg3[%c0_9, %c0_10] : memref<320x64xbf16, #tpu.memory_space<vmem>>, vector<64x64xbf16>
    %c64 = arith.constant 64 : index
    %c0_11 = arith.constant 0 : index
    %10 = vector.load %arg3[%c64, %c0_11] : memref<320x64xbf16, #tpu.memory_space<vmem>>, vector<64x64xbf16>
    %c128 = arith.constant 128 : index
    %c0_12 = arith.constant 0 : index
    %11 = vector.load %arg3[%c128, %c0_12] : memref<320x64xbf16, #tpu.memory_space<vmem>>, vector<64x64xbf16>
    %c192 = arith.constant 192 : index
    %c0_13 = arith.constant 0 : index
    %12 = vector.load %arg3[%c192, %c0_13] : memref<320x64xbf16, #tpu.memory_space<vmem>>, vector<64x64xbf16>
    %c256 = arith.constant 256 : index
    %c0_14 = arith.constant 0 : index
    %13 = vector.load %arg3[%c256, %c0_14] : memref<320x64xbf16, #tpu.memory_space<vmem>>, vector<64x64xbf16>
    %c0_15 = arith.constant 0 : index
    %c0_16 = arith.constant 0 : index
    %14 = vector.load %arg1[%c0_15, %c0_16] : memref<128x64xbf16, #tpu.memory_space<vmem>>, vector<128x64xbf16>
    %c0_17 = arith.constant 0 : index
    %c0_18 = arith.constant 0 : index
    %15 = vector.load %arg2[%c0_17, %c0_18] : memref<64x64xbf16, #tpu.memory_space<vmem>>, vector<64x64xbf16>
    %cst = arith.constant dense<0.000000e+00> : vector<128x64xf32>
    %16 = tpu.matmul %14, %15, %cst {dimension_numbers = #tpu.dot_dimension_numbers<[1], [0], [0], [1], [0, 0, 1, 1], [], []>} : vector<128x64xbf16>, vector<64x64xbf16>, vector<128x64xf32> -> vector<128x64xf32>
    %17 = vector.shape_cast %16 : vector<128x64xf32> to vector<8x16x64xf32>
    %c0_19 = arith.constant 0 : index
    %c0_20 = arith.constant 0 : index
    %18 = vector.load %arg7[%c0_19, %c0_20] : memref<16x64xf32, #tpu.memory_space<vmem>>, vector<16x64xf32>
    %19 = vector.shape_cast %18 : vector<16x64xf32> to vector<1x16x64xf32>
    %20 = vector.broadcast %19 : vector<1x16x64xf32> to vector<8x16x64xf32>
    %21 = arith.addf %17, %20 : vector<8x16x64xf32>
    %cst_21 = arith.constant dense<0.000000e+00> : vector<8x16xf32>
    %22 = vector.multi_reduction <add>, %21, %cst_21 [2] : vector<8x16x64xf32> to vector<8x16xf32>
    %23 = vector.shape_cast %22 : vector<8x16xf32> to vector<8x16x1xf32>
    %cst_22 = arith.constant 6.400000e+01 : f32
    %24 = vector.broadcast %cst_22 : f32 to vector<8x16x1xf32>
    %25 = arith.divf %23, %24 : vector<8x16x1xf32>
    %26 = vector.broadcast %25 : vector<8x16x1xf32> to vector<8x16x64xf32>
    %27 = arith.subf %21, %26 : vector<8x16x64xf32>
    %28 = arith.mulf %27, %27 : vector<8x16x64xf32>
    %cst_23 = arith.constant dense<0.000000e+00> : vector<8x16xf32>
    %29 = vector.multi_reduction <add>, %28, %cst_23 [2] : vector<8x16x64xf32> to vector<8x16xf32>
    %30 = vector.shape_cast %29 : vector<8x16xf32> to vector<8x16x1xf32>
    %cst_24 = arith.constant 6.400000e+01 : f32
    %31 = vector.broadcast %cst_24 : f32 to vector<8x16x1xf32>
    %32 = arith.divf %30, %31 : vector<8x16x1xf32>
    %33 = vector.broadcast %25 : vector<8x16x1xf32> to vector<8x16x64xf32>
    %34 = arith.subf %21, %33 : vector<8x16x64xf32>
    %cst_25 = arith.constant 9.99999974E-6 : f32
    %35 = vector.broadcast %cst_25 : f32 to vector<8x16x1xf32>
    %36 = arith.addf %32, %35 : vector<8x16x1xf32>
    %37 = math.rsqrt %36 : vector<8x16x1xf32>
    %38 = vector.broadcast %37 : vector<8x16x1xf32> to vector<8x16x64xf32>
    %39 = arith.mulf %34, %38 : vector<8x16x64xf32>
    %40 = vector.shape_cast %5 : vector<1x64xf32> to vector<1x1x64xf32>
    %41 = vector.broadcast %40 : vector<1x1x64xf32> to vector<8x16x64xf32>
    %42 = arith.mulf %39, %41 : vector<8x16x64xf32>
    %43 = vector.shape_cast %6 : vector<1x64xf32> to vector<1x1x64xf32>
    %44 = vector.broadcast %43 : vector<1x1x64xf32> to vector<8x16x64xf32>
    %45 = arith.addf %42, %44 : vector<8x16x64xf32>
    %46 = vector.shape_cast %45 : vector<8x16x64xf32> to vector<128x64xf32>
    %47 = arith.truncf %46 : vector<128x64xf32> to vector<128x64xbf16>
    %cst_26 = arith.constant dense<0.000000e+00> : vector<128x64xf32>
    %48 = tpu.matmul %47, %9, %cst_26 {dimension_numbers = #tpu.dot_dimension_numbers<[1], [0], [0], [1], [0, 0, 1, 1], [], []>} : vector<128x64xbf16>, vector<64x64xbf16>, vector<128x64xf32> -> vector<128x64xf32>
    %49 = vector.broadcast %0 : vector<1x64xf32> to vector<128x64xf32>
    %50 = arith.addf %48, %49 : vector<128x64xf32>
    %cst_27 = arith.constant dense<0.000000e+00> : vector<128x64xf32>
    %51 = tpu.matmul %47, %10, %cst_27 {dimension_numbers = #tpu.dot_dimension_numbers<[1], [0], [0], [1], [0, 0, 1, 1], [], []>} : vector<128x64xbf16>, vector<64x64xbf16>, vector<128x64xf32> -> vector<128x64xf32>
    %52 = vector.broadcast %1 : vector<1x64xf32> to vector<128x64xf32>
    %53 = arith.addf %51, %52 : vector<128x64xf32>
    %54 = vector.extract_strided_slice %45 {offsets = [0, 0, 0], sizes = [8, 1, 64], strides = [1, 1, 1]} : vector<8x16x64xf32> to vector<8x1x64xf32>
    %55 = vector.shape_cast %54 : vector<8x1x64xf32> to vector<8x64xf32>
    %56 = arith.truncf %55 : vector<8x64xf32> to vector<8x64xbf16>
    %cst_28 = arith.constant dense<0.000000e+00> : vector<8x64xf32>
    %57 = tpu.matmul %56, %11, %cst_28 {dimension_numbers = #tpu.dot_dimension_numbers<[1], [0], [0], [1], [0, 0, 1, 1], [], []>} : vector<8x64xbf16>, vector<64x64xbf16>, vector<8x64xf32> -> vector<8x64xf32>
    %58 = vector.broadcast %2 : vector<1x64xf32> to vector<8x64xf32>
    %59 = arith.addf %57, %58 : vector<8x64xf32>
    %60 = vector.shape_cast %50 : vector<128x64xf32> to vector<8x16x64xf32>
    %61 = vector.shape_cast %53 : vector<128x64xf32> to vector<8x16x64xf32>
    %62 = vector.shape_cast %59 : vector<8x64xf32> to vector<8x1x64xf32>
    %63 = vector.broadcast %62 : vector<8x1x64xf32> to vector<8x16x64xf32>
    %64 = arith.mulf %63, %60 : vector<8x16x64xf32>
    %65 = vector.shape_cast %64 : vector<8x16x64xf32> to vector<128x64xf32>
    %66 = arith.truncf %65 : vector<128x64xf32> to vector<128x64xbf16>
    %cst_29 = arith.constant dense<0.000000e+00> : vector<128x64xf32>
    %67 = tpu.matmul %66, %13, %cst_29 {dimension_numbers = #tpu.dot_dimension_numbers<[1], [0], [0], [1], [0, 0, 1, 1], [], []>} : vector<128x64xbf16>, vector<64x64xbf16>, vector<128x64xf32> -> vector<128x64xf32>
    %68 = vector.shape_cast %67 : vector<128x64xf32> to vector<8x16x64xf32>
    %c0_30 = arith.constant 0 : index
    %c0_31 = arith.constant 0 : index
    %69 = vector.load %arg8[%c0_30, %c0_31] : memref<16x64xf32, #tpu.memory_space<vmem>>, vector<16x64xf32>
    %70 = vector.shape_cast %69 : vector<16x64xf32> to vector<1x16x64xf32>
    %71 = vector.broadcast %70 : vector<1x16x64xf32> to vector<8x16x64xf32>
    %72 = arith.addf %68, %71 : vector<8x16x64xf32>
    %cst_32 = arith.constant dense<0xFF800000> : vector<8x64xf32>
    %73 = vector.multi_reduction <maximumf>, %72, %cst_32 [1] : vector<8x16x64xf32> to vector<8x64xf32>
    %74 = vector.shape_cast %73 : vector<8x64xf32> to vector<8x1x64xf32>
    %75 = vector.broadcast %74 : vector<8x1x64xf32> to vector<8x16x64xf32>
    %76 = arith.subf %72, %75 : vector<8x16x64xf32>
    %77 = math.exp %76 : vector<8x16x64xf32>
    %cst_33 = arith.constant dense<0.000000e+00> : vector<8x64xf32>
    %78 = vector.multi_reduction <add>, %77, %cst_33 [1] : vector<8x16x64xf32> to vector<8x64xf32>
    %79 = arith.mulf %77, %61 : vector<8x16x64xf32>
    %cst_34 = arith.constant dense<0.000000e+00> : vector<8x64xf32>
    %80 = vector.multi_reduction <add>, %79, %cst_34 [1] : vector<8x16x64xf32> to vector<8x64xf32>
    %81 = arith.divf %80, %78 : vector<8x64xf32>
    %82 = arith.truncf %81 : vector<8x64xf32> to vector<8x64xbf16>
    %cst_35 = arith.constant dense<0.000000e+00> : vector<8x64xf32>
    %83 = tpu.matmul %82, %12, %cst_35 {dimension_numbers = #tpu.dot_dimension_numbers<[1], [0], [0], [1], [0, 0, 1, 1], [], []>} : vector<8x64xbf16>, vector<64x64xbf16>, vector<8x64xf32> -> vector<8x64xf32>
    %84 = vector.broadcast %3 : vector<1x64xf32> to vector<8x64xf32>
    %85 = arith.addf %83, %84 : vector<8x64xf32>
    %86 = vector.extract_strided_slice %21 {offsets = [0, 0, 0], sizes = [8, 1, 64], strides = [1, 1, 1]} : vector<8x16x64xf32> to vector<8x1x64xf32>
    %87 = vector.shape_cast %86 : vector<8x1x64xf32> to vector<8x64xf32>
    %88 = arith.addf %87, %85 : vector<8x64xf32>
    %cst_36 = arith.constant dense<0.000000e+00> : vector<8xf32>
    %89 = vector.multi_reduction <add>, %88, %cst_36 [1] : vector<8x64xf32> to vector<8xf32>
    %90 = vector.shape_cast %89 : vector<8xf32> to vector<8x1xf32>
    %cst_37 = arith.constant 6.400000e+01 : f32
    %91 = vector.broadcast %cst_37 : f32 to vector<8x1xf32>
    %92 = arith.divf %90, %91 : vector<8x1xf32>
    %93 = vector.broadcast %92 : vector<8x1xf32> to vector<8x64xf32>
    %94 = arith.subf %88, %93 : vector<8x64xf32>
    %95 = arith.mulf %94, %94 : vector<8x64xf32>
    %cst_38 = arith.constant dense<0.000000e+00> : vector<8xf32>
    %96 = vector.multi_reduction <add>, %95, %cst_38 [1] : vector<8x64xf32> to vector<8xf32>
    %97 = vector.shape_cast %96 : vector<8xf32> to vector<8x1xf32>
    %cst_39 = arith.constant 6.400000e+01 : f32
    %98 = vector.broadcast %cst_39 : f32 to vector<8x1xf32>
    %99 = arith.divf %97, %98 : vector<8x1xf32>
    %100 = vector.broadcast %92 : vector<8x1xf32> to vector<8x64xf32>
    %101 = arith.subf %88, %100 : vector<8x64xf32>
    %cst_40 = arith.constant 9.99999974E-6 : f32
    %102 = vector.broadcast %cst_40 : f32 to vector<8x1xf32>
    %103 = arith.addf %99, %102 : vector<8x1xf32>
    %104 = math.rsqrt %103 : vector<8x1xf32>
    %105 = vector.broadcast %104 : vector<8x1xf32> to vector<8x64xf32>
    %106 = arith.mulf %101, %105 : vector<8x64xf32>
    %107 = vector.broadcast %7 : vector<1x64xf32> to vector<8x64xf32>
    %108 = arith.mulf %106, %107 : vector<8x64xf32>
    %109 = vector.broadcast %8 : vector<1x64xf32> to vector<8x64xf32>
    %110 = arith.addf %108, %109 : vector<8x64xf32>
    %111 = arith.truncf %110 : vector<8x64xf32> to vector<8x64xbf16>
    %c0_41 = arith.constant 0 : index
    %c0_42 = arith.constant 0 : index
    %112 = vector.load %arg4[%c0_41, %c0_42] : memref<64x128xbf16, #tpu.memory_space<vmem>>, vector<64x128xbf16>
    %cst_43 = arith.constant dense<0.000000e+00> : vector<8x128xf32>
    %113 = tpu.matmul %111, %112, %cst_43 {dimension_numbers = #tpu.dot_dimension_numbers<[1], [0], [0], [1], [0, 0, 1, 1], [], []>} : vector<8x64xbf16>, vector<64x128xbf16>, vector<8x128xf32> -> vector<8x128xf32>
    %c0_44 = arith.constant 0 : index
    %c0_45 = arith.constant 0 : index
    %114 = vector.load %arg10[%c0_44, %c0_45] : memref<1x128xf32, #tpu.memory_space<vmem>>, vector<1x128xf32>
    %115 = vector.broadcast %114 : vector<1x128xf32> to vector<8x128xf32>
    %116 = arith.addf %113, %115 : vector<8x128xf32>
    %cst_46 = arith.constant 5.000000e-01 : f32
    %117 = vector.broadcast %cst_46 : f32 to vector<8x128xf32>
    %118 = arith.mulf %117, %116 : vector<8x128xf32>
    %cst_47 = arith.constant 0.707106769 : f32
    %119 = vector.broadcast %cst_47 : f32 to vector<8x128xf32>
    %120 = arith.mulf %116, %119 : vector<8x128xf32>
    %121 = math.erf %120 : vector<8x128xf32>
    %cst_48 = arith.constant 1.000000e+00 : f32
    %122 = vector.broadcast %cst_48 : f32 to vector<8x128xf32>
    %123 = arith.addf %122, %121 : vector<8x128xf32>
    %124 = arith.mulf %118, %123 : vector<8x128xf32>
    %125 = arith.truncf %124 : vector<8x128xf32> to vector<8x128xbf16>
    %c0_49 = arith.constant 0 : index
    %c0_50 = arith.constant 0 : index
    %126 = vector.load %arg5[%c0_49, %c0_50] : memref<128x64xbf16, #tpu.memory_space<vmem>>, vector<128x64xbf16>
    %cst_51 = arith.constant dense<0.000000e+00> : vector<8x64xf32>
    %127 = tpu.matmul %125, %126, %cst_51 {dimension_numbers = #tpu.dot_dimension_numbers<[1], [0], [0], [1], [0, 0, 1, 1], [], []>} : vector<8x128xbf16>, vector<128x64xbf16>, vector<8x64xf32> -> vector<8x64xf32>
    %128 = vector.broadcast %4 : vector<1x64xf32> to vector<8x64xf32>
    %129 = arith.addf %127, %128 : vector<8x64xf32>
    %130 = arith.addf %88, %129 : vector<8x64xf32>
    %131 = arith.truncf %130 : vector<8x64xf32> to vector<8x64xbf16>
    %c0_52 = arith.constant 0 : index
    %c0_53 = arith.constant 0 : index
    %132 = vector.load %arg6[%c0_52, %c0_53] : memref<64x128xbf16, #tpu.memory_space<vmem>>, vector<64x128xbf16>
    %cst_54 = arith.constant dense<0.000000e+00> : vector<8x128xf32>
    %133 = tpu.matmul %131, %132, %cst_54 {dimension_numbers = #tpu.dot_dimension_numbers<[1], [0], [0], [1], [0, 0, 1, 1], [], []>} : vector<8x64xbf16>, vector<64x128xbf16>, vector<8x128xf32> -> vector<8x128xf32>
    %c0_55 = arith.constant 0 : index
    %c0_56 = arith.constant 0 : index
    %134 = vector.load %arg11[%c0_55, %c0_56] : memref<1x128xf32, #tpu.memory_space<vmem>>, vector<1x128xf32>
    %135 = vector.broadcast %134 : vector<1x128xf32> to vector<8x128xf32>
    %136 = arith.addf %133, %135 : vector<8x128xf32>
    %c0_57 = arith.constant 0 : index
    %c0_58 = arith.constant 0 : index
    %137 = vector.load %arg12[%c0_57, %c0_58] : memref<8x128xf32, #tpu.memory_space<vmem>>, vector<8x128xf32>
    tpu.vector_store %arg12[%c0_57, %c0_58], %136 {strides = array<i32>} : memref<8x128xf32, #tpu.memory_space<vmem>>, vector<8x128xf32>,
    return
  }
  func.func @transform_0(%arg0: i32) -> (i32, i32) {
    %c0_i32 = arith.constant 0 : i32
    %c0_i32_0 = arith.constant 0 : i32
    return %arg0, %c0_i32 : i32, i32
  }
  func.func @transform_1(%arg0: i32) -> (i32, i32) {
    %c0_i32 = arith.constant 0 : i32
    %c0_i32_0 = arith.constant 0 : i32
    %c0_i32_1 = arith.constant 0 : i32
    return %c0_i32, %c0_i32_0 : i32, i32
  }
  func.func @transform_2(%arg0: i32) -> (i32, i32) {
    %c0_i32 = arith.constant 0 : i32
    %c0_i32_0 = arith.constant 0 : i32
    %c0_i32_1 = arith.constant 0 : i32
    return %c0_i32, %c0_i32_0 : i32, i32
  }
  func.func @transform_3(%arg0: i32) -> (i32, i32) {
    %c0_i32 = arith.constant 0 : i32
    %c0_i32_0 = arith.constant 0 : i32
    %c0_i32_1 = arith.constant 0 : i32
    return %c0_i32, %c0_i32_0 : i32, i32
  }
  func.func @transform_4(%arg0: i32) -> (i32, i32) {
    %c0_i32 = arith.constant 0 : i32
    %c0_i32_0 = arith.constant 0 : i32
    %c0_i32_1 = arith.constant 0 : i32
    return %c0_i32, %c0_i32_0 : i32, i32
  }
  func.func @transform_5(%arg0: i32) -> (i32, i32) {
    %c0_i32 = arith.constant 0 : i32
    %c0_i32_0 = arith.constant 0 : i32
    %c0_i32_1 = arith.constant 0 : i32
    return %c0_i32, %c0_i32_0 : i32, i32
  }
  func.func @transform_6(%arg0: i32) -> (i32, i32) {
    %c0_i32 = arith.constant 0 : i32
    %c0_i32_0 = arith.constant 0 : i32
    %c0_i32_1 = arith.constant 0 : i32
    return %c0_i32, %c0_i32_0 : i32, i32
  }
  func.func @transform_7(%arg0: i32) -> (i32, i32) {
    %c0_i32 = arith.constant 0 : i32
    %c0_i32_0 = arith.constant 0 : i32
    %c0_i32_1 = arith.constant 0 : i32
    return %c0_i32, %c0_i32_0 : i32, i32
  }
  func.func @transform_8(%arg0: i32) -> (i32, i32) {
    %c0_i32 = arith.constant 0 : i32
    %c0_i32_0 = arith.constant 0 : i32
    %c0_i32_1 = arith.constant 0 : i32
    return %c0_i32, %c0_i32_0 : i32, i32
  }
  func.func @transform_9(%arg0: i32) -> (i32, i32) {
    %c0_i32 = arith.constant 0 : i32
    %c0_i32_0 = arith.constant 0 : i32
    %c0_i32_1 = arith.constant 0 : i32
    return %c0_i32, %c0_i32_0 : i32, i32
  }
  func.func @transform_10(%arg0: i32) -> (i32, i32) {
    %c0_i32 = arith.constant 0 : i32
    %c0_i32_0 = arith.constant 0 : i32
    %c0_i32_1 = arith.constant 0 : i32
    return %c0_i32, %c0_i32_0 : i32, i32
  }
  func.func @transform_11(%arg0: i32) -> (i32, i32) {
    %c0_i32 = arith.constant 0 : i32
    %c0_i32_0 = arith.constant 0 : i32
    return %arg0, %c0_i32 : i32, i32
  }
}

</mosaic_0001>

<bundles_post_ra>
// kernel: tpu_custom_call.1
= control target key start
LH: loop header
LB: loop body
LE: loop exit
PB: predicated region body
PF: predicated region fallthrough
CT: control target
= control target key end

     0   :  { %vm177_vm0 = vcmask 523264   ;;  %s3607_s0 = inlined_call_operand.vmem [shape: bf16[128,64], index: 0, kind: input, shape index: {}]   ;;  %s3608_s1 = inlined_call_operand.vmem [shape: bf16[64,64], index: 1, kind: input, shape index: {}]   ;;  %s3609_s2 = inlined_call_operand.vmem [shape: bf16[320,64], index: 2, kind: input, shape index: {}]   ;;  %s3610_s3 = inlined_call_operand.vmem [shape: bf16[64,128], index: 3, kind: input, shape index: {}]   ;;  %s3611_s4 = inlined_call_operand.vmem [shape: bf16[128,64], index: 4, kind: input, shape index: {}]   ;;  %s3612_s5 = inlined_call_operand.vmem [shape: bf16[64,128], index: 5, kind: input, shape index: {}]   ;;  %s3613_s6 = inlined_call_operand.vmem [shape: f32[16,64], index: 6, kind: input, shape index: {}]   ;;  %s3614_s7 = inlined_call_operand.vmem [shape: f32[16,64], index: 7, kind: input, shape index: {}]   ;;  %s3615_s8 = inlined_call_operand.vmem [shape: f32[9,64], index: 8, kind: input, shape index: {}]   ;;  %s3616_s9 = inlined_call_operand.vmem [shape: f32[1,128], index: 9, kind: input, shape index: {}]   ;;  %s3617_s10 = inlined_call_operand.vmem [shape: f32[1,128], index: 10, kind: input, shape index: {}]   ;;  %s3618_s11 = inlined_call_operand.hbm [shape: f32[8,128], index: 11, kind: output, shape index: {}]  }
   0x1   :  { %v2536_v0 = vld [vmem:[%s3608_s1 + $0x18] sm:$0xff]   ;;  %v2537_v1 = vld [vmem:[%s3608_s1 + $0x10] sm:$0xff]   ;;  %v2538_v2 = vld [vmem:[%s3608_s1 + $0x8] sm:$0xff]  }
   0x2   :  { %2368 = vmatprep.subr.bf16.mxu0 %v2536_v0  ;;  %v2540_v3 = vld [vmem:[%s3607_s0] sm:$0xff]   ;;  %v2541_v5 = vld [vmem:[%s3607_s0 + $0x8] sm:$0xff]   ;;  %v2542_v6 = vld [vmem:[%s3607_s0 + $0x10] sm:$0xff]  }
   0x3   :  { %2369 = vmatpush3.bf16.msra.mxu0 %v2536_v0  ;;  %2376 = vmatprep.mubr.msk.bf16.mxu0 %vm177_vm0, %v2540_v3  ;;  %v2539_v4 = vld [vmem:[%s3608_s1] sm:$0xff]   ;;  %v2543_v7 = vld [vmem:[%s3607_s0 + $0x18] sm:$0xff]   ;;  %v2545_v9 = vld [vmem:[%s3607_s0 + $0x28] sm:$0xff]  }
   0x4   :  { %2370 = vmatprep.subr.bf16.mxu0 %v2537_v1  ;;  %v2544_v8 = vld [vmem:[%s3607_s0 + $0x20] sm:$0xff]   ;;  %v2546_v10 = vld [vmem:[%s3607_s0 + $0x30] sm:$0xff]  }
   0x7   :  { %2371 = vmatpush3.bf16.msra.mxu0 %v2537_v1 }
   0x8   :  { %2372 = vmatprep.subr.bf16.mxu0 %v2538_v2 }
   0xb   :  { %2373 = vmatpush3.bf16.msra.mxu0 %v2538_v2 }
   0xc   :  { %2374 = vmatprep.subr.bf16.mxu0 %v2539_v4 }
   0xf   :  { %2375 = vmatpush3.bf16.msra.mxu0 %v2539_v4 }
  0x12   :  { %2377 = vmatmul.mubr.msk.bf16.vlgmr.msra.gmra.mxu0 %vm177_vm0, %v2541_v5 }
  0x13   :  { %2380 = vmatprep.mubr.msk.bf16.mxu0 %vm177_vm0, %v2542_v6 }
  0x1a   :  { %2381 = vmatmul.mubr.msk.bf16.gmra.mxu0 %vm177_vm0, %v2543_v7 }
  0x1b   :  { %2384 = vmatprep.mubr.msk.bf16.mxu0 %vm177_vm0, %v2544_v8 }
  0x22   :  { %2385 = vmatmul.mubr.msk.bf16.gmra.mxu0 %vm177_vm0, %v2545_v9 }
  0x23   :  { %2388 = vmatprep.mubr.msk.bf16.mxu0 %vm177_vm0, %v2546_v10 }
  0x24   :  { %16 = vsyncpa [#allocation3], 0  ;;  %v2547_v11 = vld [vmem:[%s3607_s0 + $0x38] sm:$0xff]   ;;  %v299_v12 = vld [vmem:[%s3613_s6] sm:$0xff]  ;;  %vm877_vm1 = vcmask 1041409   ;;  %vm880_vm2 = vcmask 1042434  }
  0x25   :  { %v300_v16 = vld [vmem:[%s3613_s6 + $0x8] sm:$0xff]  ;;  %vm883_vm3 = vcmask 1043459   ;;  %vm886_vm4 = vcmask 1044484   ;;  %vm889_vm5 = vcmask 1045509   ;;  %vm892_vm6 = vcmask 1046534   ;;  %s2693_s0 = smov [#allocation2]  }
  0x26   :  { %vm895_vm7 = vcmask 1047559   ;;  %vm2691_vm8 = vmmov 0   ;;  %s2188_s6 = sshll.u32 %s2693_s0, 4  ;;  %s2189_s6 = int_to_ptr.vmem [resolvable:$true] %s2188_s6 }
  0x27   :  { %s2668_s25 = scalar_lea.vmem %s2189_s6, 128  ;;  %p2673_p1 = scmp.lt.s32.totalorder %s2189_s6, %s2189_s6 }
  0x28   :  { %p2669_p0 = scmp.ne.s32.totalorder %s2189_s6, %s2668_s25  ;;  %p2674_p2 = scmp.lt.s32.totalorder %s2668_s25, %s2668_s25 }
  0x2a   :  { %2389 = vmatmul.mubr.msk.bf16.gmra.mxu0 %vm177_vm0, %v2547_v11  ;;  %p2675_p3 = por %p2674_p2, %p2673_p1 }
  0x2c   :  { %p2676_p4 = pnand %p2675_p3, %p2669_p0 }
  0xd2   :  { %v2378_v13 = vpop.f32.mrf.mxu0 }
  0xd3   :  { %v2801_v14 = vadd.f32 %v2378_v13, %v299_v12 }
  0xd4   :  { %v236_v15 = vpop.f32.mrf.mxu0 }
  0xd5   :  { %v2806_v17 = vadd.f32 %v299_v12, %v236_v15  ;;  %v323_v18 = vsel %vm177_vm0, %v2801_v14, 0.0 }
  0xd6   :  { %324 = vadd.xlane.f32.xlu1 %v323_v18  ;;  %v2379_v19 = vpop.f32.mrf.mxu0 }
  0xd7   :  { %v2810_v20 = vadd.f32 %v2379_v19, %v300_v16  ;;  %v317_v21 = vsel %vm177_vm0, %v2806_v17, 0.0 }
  0xd8   :  { %318 = vadd.xlane.f32.xlu0 %v317_v21  ;;  %v239_v22 = vpop.f32.mrf.mxu0 }
  0xd9   :  { %v2814_v23 = vadd.f32 %v300_v16, %v239_v22  ;;  %v326_v24 = vsel %vm177_vm0, %v2810_v20, 0.0 }
  0xda   :  { %327 = vadd.xlane.f32.xlu1 %v326_v24  ;;  %v2382_v25 = vpop.f32.mrf.mxu0 }
  0xdb   :  { %v320_v26 = vsel %vm177_vm0, %v2814_v23, 0.0  ;;  %v2822_v30 = vadd.f32 %v2382_v25, %v299_v12 }
  0xdc   :  { %321 = vadd.xlane.f32.xlu0 %v320_v26  ;;  %v252_v27 = vpop.f32.mrf.mxu0 }
  0xdd   :  { %v2820_v28 = vadd.f32 %v299_v12, %v252_v27  ;;  %v335_v36 = vsel %vm177_vm0, %v2822_v30, 0.0 }
  0xde   :  { %v2383_v29 = vpop.f32.mrf.mxu0 }
  0xdf   :  { %v329_v31 = vsel %vm177_vm0, %v2820_v28, 0.0  ;;  %v2828_v35 = vadd.f32 %v2383_v29, %v300_v16 }
  0xe0   :  { %330 = vadd.xlane.f32.xlu0 %v329_v31  ;;  %v255_v32 = vpop.f32.mrf.mxu0 }
  0xe1   :  { %v2826_v33 = vadd.f32 %v300_v16, %v255_v32  ;;  %v338_v42 = vsel %vm177_vm0, %v2828_v35, 0.0 }
  0xe2   :  { %v2386_v34 = vpop.f32.mrf.mxu0 }
  0xe3   :  { %v332_v37 = vsel %vm177_vm0, %v2826_v33, 0.0  ;;  %v2836_v41 = vadd.f32 %v2386_v34, %v299_v12 }
  0xe4   :  { %336 = vadd.xlane.f32.xlu0 %v335_v36  ;;  %333 = vadd.xlane.f32.xlu1 %v332_v37  ;;  %v268_v38 = vpop.f32.mrf.mxu0 }
  0xe5   :  { %v2834_v39 = vadd.f32 %v299_v12, %v268_v38  ;;  %v347_v48 = vsel %vm177_vm0, %v2836_v41, 0.0 }
  0xe6   :  { %v2387_v40 = vpop.f32.mrf.mxu0 }
  0xe7   :  { %v341_v43 = vsel %vm177_vm0, %v2834_v39, 0.0  ;;  %v2844_v47 = vadd.f32 %v2387_v40, %v300_v16 }
  0xe8   :  { %339 = vadd.xlane.f32.xlu1 %v338_v42  ;;  %342 = vadd.xlane.f32.xlu0 %v341_v43  ;;  %v271_v44 = vpop.f32.mrf.mxu0 }
  0xe9   :  { %v2842_v45 = vadd.f32 %v300_v16, %v271_v44  ;;  %v350_v54 = vsel %vm177_vm0, %v2844_v47, 0.0 }
  0xea   :  { %v2390_v46 = vpop.f32.mrf.mxu0 }
  0xeb   :  { %v344_v49 = vsel %vm177_vm0, %v2842_v45, 0.0  ;;  %v2852_v53 = vadd.f32 %v2390_v46, %v299_v12 }
  0xec   :  { %348 = vadd.xlane.f32.xlu0 %v347_v48  ;;  %345 = vadd.xlane.f32.xlu1 %v344_v49  ;;  %v284_v50 = vpop.f32.mrf.mxu0 }
  0xed   :  { %v2850_v51 = vadd.f32 %v299_v12, %v284_v50  ;;  %v359_v59 = vsel %vm177_vm0, %v2852_v53, 0.0 }
  0xee   :  { %v2391_v52 = vpop.f32.mrf.mxu0 }
  0xef   :  { %v353_v55 = vsel %vm177_vm0, %v2850_v51, 0.0  ;;  %v2860_v58 = vadd.f32 %v2391_v52, %v300_v16 }
  0xf0   :  { %351 = vadd.xlane.f32.xlu1 %v350_v54  ;;  %354 = vadd.xlane.f32.xlu0 %v353_v55  ;;  %v287_v56 = vpop.f32.mrf.mxu0 }
  0xf1   :  { %v2858_v57 = vadd.f32 %v300_v16, %v287_v56  ;;  %v362_v61 = vsel %vm177_vm0, %v2860_v58, 0.0 }
  0xf3   :  { %v356_v60 = vsel %vm177_vm0, %v2858_v57, 0.0 }
  0xf4   :  { %360 = vadd.xlane.f32.xlu0 %v359_v59  ;;  %357 = vadd.xlane.f32.xlu1 %v356_v60 }
  0xf8   :  { %363 = vadd.xlane.f32.xlu1 %v362_v61 }
 0x15f   :  { %v325_v62 = vpop.xlane.xlu1 %324 }
 0x160   :  { %v368_v63 = vmul.f32 0.015625, %v325_v62 }
 0x161   :  { %v319_v0 = vpop.xlane.xlu0 %318 }
 0x162   :  { %v366_v1 = vmul.f32 0.015625, %v319_v0  ;;  %v2869_v3 = vsub.f32 %v2801_v14, %v368_v63 }
 0x163   :  { %v328_v2 = vpop.xlane.xlu1 %327 }
 0x164   :  { %v2872_v4 = vsub.f32 %v2806_v17, %v366_v1  ;;  %v369_v5 = vmul.f32 0.015625, %v328_v2  ;;  %v400_v12 = vmul.f32 %v2869_v3, %v2869_v3 }
 0x165   :  { %v322_v6 = vpop.xlane.xlu0 %321 }
 0x166   :  { %v367_v7 = vmul.f32 0.015625, %v322_v6  ;;  %v398_v8 = vmul.f32 %v2872_v4, %v2872_v4  ;;  %v2877_v9 = vsub.f32 %v2810_v20, %v369_v5  ;;  %v420_v19 = vsel %vm177_vm0, %v400_v12, 0.0 }
 0x168   :  { %v2880_v10 = vsub.f32 %v2814_v23, %v367_v7  ;;  %v414_v11 = vsel %vm177_vm0, %v398_v8, 0.0  ;;  %v401_v21 = vmul.f32 %v2877_v9, %v2877_v9 }
 0x169   :  { %v331_v13 = vpop.xlane.xlu0 %330  ;;  %415 = vadd.xlane.f32.xlu0 %v414_v11 }
 0x16a   :  { %v370_v15 = vmul.f32 0.015625, %v331_v13  ;;  %v399_v16 = vmul.f32 %v2880_v10, %v2880_v10  ;;  %v423_v32 = vsel %vm177_vm0, %v401_v21, 0.0 }
 0x16c   :  { %v2888_v18 = vsub.f32 %v2820_v28, %v370_v15  ;;  %v417_v20 = vsel %vm177_vm0, %v399_v16, 0.0 }
 0x16d   :  { %v337_v22 = vpop.xlane.xlu0 %336  ;;  %v334_v23 = vpop.xlane.xlu1 %333  ;;  %421 = vadd.xlane.f32.xlu0 %v420_v19  ;;  %418 = vadd.xlane.f32.xlu1 %v417_v20 }
 0x16e   :  { %v372_v24 = vmul.f32 0.015625, %v337_v22  ;;  %v371_v25 = vmul.f32 0.015625, %v334_v23  ;;  %v402_v26 = vmul.f32 %v2888_v18, %v2888_v18 }
 0x170   :  { %v2897_v27 = vsub.f32 %v2822_v30, %v372_v24  ;;  %v2900_v29 = vsub.f32 %v2826_v33, %v371_v25  ;;  %v426_v31 = vsel %vm177_vm0, %v402_v26, 0.0 }
 0x171   :  { %v340_v34 = vpop.xlane.xlu1 %339  ;;  %v343_v36 = vpop.xlane.xlu0 %342  ;;  %427 = vadd.xlane.f32.xlu0 %v426_v31  ;;  %424 = vadd.xlane.f32.xlu1 %v423_v32  ;;  %v2548_v32 = vld [vmem:[%s3609_s2 + $0x18] sm:$0xff]  }
 0x172   :  { %v373_v37 = vmul.f32 0.015625, %v340_v34  ;;  %v374_v38 = vmul.f32 0.015625, %v343_v36  ;;  %v404_v40 = vmul.f32 %v2897_v27, %v2897_v27  ;;  %v403_v42 = vmul.f32 %v2900_v29, %v2900_v29  ;;  %v2549_v34 = vld [vmem:[%s3609_s2 + $0x38] sm:$0xff]   ;;  %2392 = vmatprep.subr.bf16.mxu1 %v2548_v32 }
 0x173   :  { %2416 = vmatprep.subr.bf16.mxu0 %v2549_v34  ;;  %2393 = vmatpush3.bf16.msra.mxu1 %v2548_v32 }
 0x174   :  { %v2909_v43 = vsub.f32 %v2828_v35, %v373_v37  ;;  %v2912_v33 = vsub.f32 %v2834_v39, %v374_v38  ;;  %v432_v44 = vsel %vm177_vm0, %v404_v40, 0.0  ;;  %v429_v46 = vsel %vm177_vm0, %v403_v42, 0.0  ;;  %2417 = vmatpush3.bf16.msra.mxu0 %v2549_v34  ;;  %v2550_v37 = vld [vmem:[%s3609_s2 + $0x10] sm:$0xff]   ;;  %v2552_v40 = vld [vmem:[%s3609_s2 + $0x8] sm:$0xff]  }
 0x175   :  { %v349_v48 = vpop.xlane.xlu0 %348  ;;  %v346_v49 = vpop.xlane.xlu1 %345  ;;  %433 = vadd.xlane.f32.xlu0 %v432_v44  ;;  %430 = vadd.xlane.f32.xlu1 %v429_v46  ;;  %v2551_v38 = vld [vmem:[%s3609_s2 + $0x30] sm:$0xff]   ;;  %v2553_v42 = vld [vmem:[%s3609_s2 + $0x28] sm:$0xff]   ;;  %v2554_v44 = vld [vmem:[%s3609_s2] sm:$0xff]  }
 0x176   :  { %v376_v50 = vmul.f32 0.015625, %v349_v48  ;;  %v375_v52 = vmul.f32 0.015625, %v346_v49  ;;  %v406_v54 = vmul.f32 %v2912_v33, %v2912_v33  ;;  %v405_v35 = vmul.f32 %v2909_v43, %v2909_v43  ;;  %2394 = vmatprep.subr.bf16.mxu1 %v2550_v37  ;;  %2418 = vmatprep.subr.bf16.mxu0 %v2551_v38  ;;  %v2555_v46 = vld [vmem:[%s3609_s2 + $0x20] sm:$0xff]  }
 0x177   :  { %2395 = vmatpush3.bf16.msra.mxu1 %v2550_v37  ;;  %v2690_v48 = vmov 0.0   ;;  %v2994_v37 = vld [vmem:[%s3615_s8 + $0x5] ss:$0 sm:$0xff] }
 0x178   :  { %v2921_v55 = vsub.f32 %v2836_v41, %v376_v50  ;;  %v2924_v56 = vsub.f32 %v2842_v45, %v375_v52  ;;  %v438_v59 = vsel %vm177_vm0, %v406_v54, 0.0  ;;  %v435_v60 = vsel %vm177_vm0, %v405_v35, 0.0  ;;  %2419 = vmatpush3.bf16.msra.mxu0 %v2551_v38  ;;  %2396 = vmatprep.subr.bf16.mxu1 %v2552_v40 }
 0x179   :  { %v352_v61 = vpop.xlane.xlu1 %351  ;;  %439 = vadd.xlane.f32.xlu0 %v438_v59  ;;  %v355_v62 = vpop.xlane.xlu0 %354  ;;  %436 = vadd.xlane.f32.xlu1 %v435_v60 }
 0x17a   :  { %v377_v63 = vmul.f32 0.015625, %v352_v61  ;;  %v378_v0 = vmul.f32 0.015625, %v355_v62  ;;  %v408_v1 = vmul.f32 %v2921_v55, %v2921_v55  ;;  %v407_v2 = vmul.f32 %v2924_v56, %v2924_v56  ;;  %2420 = vmatprep.subr.bf16.mxu0 %v2553_v42 }
 0x17b   :  { %2397 = vmatpush3.bf16.msra.mxu1 %v2552_v40 }
 0x17c   :  { %v2933_v5 = vsub.f32 %v2844_v47, %v377_v63  ;;  %v2936_v45 = vsub.f32 %v2850_v51, %v378_v0  ;;  %v444_v6 = vsel %vm177_vm0, %v408_v1, 0.0  ;;  %v441_v7 = vsel %vm177_vm0, %v407_v2, 0.0  ;;  %2421 = vmatpush3.bf16.msra.mxu0 %v2553_v42  ;;  %2398 = vmatprep.subr.bf16.mxu1 %v2554_v44 }
 0x17d   :  { %445 = vadd.xlane.f32.xlu0 %v444_v6  ;;  %v361_v8 = vpop.xlane.xlu0 %360  ;;  %442 = vadd.xlane.f32.xlu1 %v441_v7  ;;  %v358_v11 = vpop.xlane.xlu1 %357 }
 0x17e   :  { %v380_v12 = vmul.f32 0.015625, %v361_v8  ;;  %v379_v13 = vmul.f32 0.015625, %v358_v11  ;;  %v410_v15 = vmul.f32 %v2936_v45, %v2936_v45  ;;  %v409_v47 = vmul.f32 %v2933_v5, %v2933_v5  ;;  %2422 = vmatprep.subr.bf16.mxu0 %v2555_v46 }
 0x17f   :  { %2399 = vmatpush3.bf16.msra.mxu1 %v2554_v44 }
 0x180   :  { %v2945_v16 = vsub.f32 %v2852_v53, %v380_v12  ;;  %v2948_v19 = vsub.f32 %v2858_v57, %v379_v13  ;;  %v450_v20 = vsel %vm177_vm0, %v410_v15, 0.0  ;;  %v447_v21 = vsel %vm177_vm0, %v409_v47, 0.0  ;;  %2423 = vmatpush3.bf16.msra.mxu0 %v2555_v46  ;;  %2440 = vmatprep.subr.bf16.mxu1 %v2690_v48 }
 0x181   :  { %451 = vadd.xlane.f32.xlu0 %v450_v20  ;;  %448 = vadd.xlane.f32.xlu1 %v447_v21  ;;  %v364_v22 = vpop.xlane.xlu1 %363 }
 0x182   :  { %v381_v23 = vmul.f32 0.015625, %v364_v22  ;;  %v412_v24 = vmul.f32 %v2945_v16, %v2945_v16  ;;  %v411_v25 = vmul.f32 %v2948_v19, %v2948_v19  ;;  %2476 = vmatprep.subr.bf16.mxu0 %v2690_v48 }
 0x184   :  { %v2957_v26 = vsub.f32 %v2860_v58, %v381_v23  ;;  %v456_v57 = vsel %vm177_vm0, %v412_v24, 0.0  ;;  %v453_v31 = vsel %vm177_vm0, %v411_v25, 0.0 }
 0x185   :  { %457 = vadd.xlane.f32.xlu0 %v456_v57  ;;  %454 = vadd.xlane.f32.xlu1 %v453_v31 }
 0x186   :  { %v413_v36 = vmul.f32 %v2957_v26, %v2957_v26 }
 0x188   :  { %v459_v58 = vsel %vm177_vm0, %v413_v36, 0.0 }
 0x189   :  { %460 = vadd.xlane.f32.xlu1 %v459_v58 }
 0x1f2   :  { %v416_v49 = vpop.xlane.xlu0 %415 }
 0x1f3   :  { %v462_v50 = vmul.f32 0.015625, %v416_v49 }
 0x1f5   :  { %v478_v52 = vadd.f32 1e-05, %v462_v50 }
 0x1f6   :  { %v422_v54 = vpop.xlane.xlu0 %421  ;;  %v419_v35 = vpop.xlane.xlu1 %418 }
 0x1f7   :  { %2584 = vrsqrt.f32 %v478_v52  ;;  %v464_v59 = vmul.f32 0.015625, %v422_v54  ;;  %v463_v60 = vmul.f32 0.015625, %v419_v35 }
 0x1f9   :  { %v480_v61 = vadd.f32 1e-05, %v464_v59  ;;  %v479_v62 = vadd.f32 1e-05, %v463_v60  ;;  %v3002_v59 = vld [vmem:[%s3615_s8 + $0x6] ss:$0 sm:$0xff] }
 0x1fa   :  { %v428_v63 = vpop.xlane.xlu0 %427  ;;  %v425_v0 = vpop.xlane.xlu1 %424 }
 0x1fb   :  { %2586 = vrsqrt.f32 %v480_v61  ;;  %v466_v1 = vmul.f32 0.015625, %v428_v63  ;;  %v465_v2 = vmul.f32 0.015625, %v425_v0 }
 0x1fc   :  { %2588 = vrsqrt.f32 %v479_v62 }
 0x1fd   :  { %v482_v6 = vadd.f32 1e-05, %v466_v1  ;;  %v481_v7 = vadd.f32 1e-05, %v465_v2 }
 0x1fe   :  { %v434_v8 = vpop.xlane.xlu0 %433  ;;  %v431_v11 = vpop.xlane.xlu1 %430 }
 0x1ff   :  { %2590 = vrsqrt.f32 %v482_v6  ;;  %v468_v12 = vmul.f32 0.015625, %v434_v8  ;;  %v467_v13 = vmul.f32 0.015625, %v431_v11 }
 0x200   :  { %2592 = vrsqrt.f32 %v481_v7 }
 0x201   :  { %v484_v15 = vadd.f32 1e-05, %v468_v12  ;;  %v483_v47 = vadd.f32 1e-05, %v467_v13 }
 0x202   :  { %v440_v20 = vpop.xlane.xlu0 %439  ;;  %v437_v21 = vpop.xlane.xlu1 %436 }
 0x203   :  { %2594 = vrsqrt.f32 %v484_v15  ;;  %v470_v22 = vmul.f32 0.015625, %v440_v20  ;;  %v469_v23 = vmul.f32 0.015625, %v437_v21 }
 0x204   :  { %v2585_v24 = vpop.eup %2584  ;;  %2596 = vrsqrt.f32 %v483_v47 }
 0x205   :  { %v486_v25 = vadd.f32 1e-05, %v470_v22  ;;  %v485_v57 = vadd.f32 1e-05, %v469_v23  ;;  %v510_v34 = vmul.f32 %v2585_v24, %v2872_v4 }
 0x206   :  { %v446_v31 = vpop.xlane.xlu0 %445  ;;  %v443_v32 = vpop.xlane.xlu1 %442 }
 0x207   :  { %2598 = vrsqrt.f32 %v486_v25  ;;  %v472_v36 = vmul.f32 0.015625, %v446_v31  ;;  %v471_v58 = vmul.f32 0.015625, %v443_v32  ;;  %v530_v52 = vmul.f32 %v2994_v37, %v510_v34  ;;  %v2556_v32 = vld [vmem:[%s3609_s2 + $0x58] sm:$0xff]  }
 0x208   :  { %v2587_v38 = vpop.eup %2586  ;;  %2600 = vrsqrt.f32 %v485_v57 }
 0x209   :  { %v2589_v40 = vpop.eup %2588  ;;  %v488_v42 = vadd.f32 1e-05, %v472_v36  ;;  %v487_v44 = vadd.f32 1e-05, %v471_v58  ;;  %v512_v4 = vmul.f32 %v2587_v38, %v2869_v3  ;;  %v3007_v3 = vadd.f32 %v3002_v59, %v530_v52 }
 0x20a   :  { %v452_v46 = vpop.xlane.xlu0 %451  ;;  %v449_v49 = vpop.xlane.xlu1 %448  ;;  %v511_v50 = vmul.f32 %v2589_v40, %v2880_v10 }
 0x20b   :  { %2602 = vrsqrt.f32 %v488_v42  ;;  %v474_v54 = vmul.f32 0.015625, %v452_v46  ;;  %v473_v35 = vmul.f32 0.015625, %v449_v49  ;;  %v532_v8 = vmul.f32 %v2994_v37, %v512_v4  ;;  %v2557_v49 = vld [vmem:[%s3609_s2 + $0x50] sm:$0xff]  }
 0x20c   :  { %v2591_v60 = vpop.eup %2590  ;;  %2604 = vrsqrt.f32 %v487_v44  ;;  %v531_v61 = vmul.f32 %v2994_v37, %v511_v50 }
 0x20d   :  { %v2593_v62 = vpop.eup %2592  ;;  %v490_v63 = vadd.f32 1e-05, %v474_v54  ;;  %v489_v0 = vadd.f32 1e-05, %v473_v35  ;;  %v514_v10 = vmul.f32 %v2591_v60, %v2888_v18  ;;  %v3019_v24 = vadd.f32 %v3002_v59, %v532_v8 }
 0x20e   :  { %v458_v1 = vpop.xlane.xlu0 %457  ;;  %v455_v2 = vpop.xlane.xlu1 %454  ;;  %v551_v6 = vadd.f32 %v3002_v59, %v531_v61  ;;  %v513_v7 = vmul.f32 %v2593_v62, %v2877_v9 }
 0x20f   :  { %2606 = vrsqrt.f32 %v490_v63  ;;  %v476_v11 = vmul.f32 0.015625, %v458_v1  ;;  %v475_v12 = vmul.f32 0.015625, %v455_v2  ;;  %v534_v22 = vmul.f32 %v2994_v37, %v514_v10  ;;  %v2558_v63 = vld [vmem:[%s3609_s2 + $0x48] sm:$0xff]  }
 0x210   :  { %v2595_v13 = vpop.eup %2594  ;;  %2608 = vrsqrt.f32 %v489_v0  ;;  %v566_v15 = vpack.c.bf16 %v551_v6, %v3007_v3  ;;  %v533_v18 = vmul.f32 %v2994_v37, %v513_v7  ;;  %v849_v8 = vpack.c.bf16 %v3019_v24, %v3019_v24 }
 0x211   :  { %v2597_v47 = vpop.eup %2596  ;;  %v492_v20 = vadd.f32 1e-05, %v476_v11  ;;  %v491_v21 = vadd.f32 1e-05, %v475_v12  ;;  %v516_v23 = vmul.f32 %v2595_v13, %v2897_v27  ;;  %v554_v40 = vadd.f32 %v3002_v59, %v534_v22 }
 0x212   :  { %2400 = vmatprep.mubr.msk.bf16.mxu1 %vm177_vm0, %v566_v15  ;;  %2424 = vmatprep.mubr.msk.bf16.mxu0 %vm177_vm0, %v566_v15  ;;  %v461_v9 = vpop.xlane.xlu1 %460  ;;  %v553_v25 = vadd.f32 %v3002_v59, %v533_v18  ;;  %v515_v57 = vmul.f32 %v2597_v47, %v2900_v29 }
 0x213   :  { %2610 = vrsqrt.f32 %v492_v20  ;;  %v477_v31 = vmul.f32 0.015625, %v461_v9  ;;  %v536_v42 = vmul.f32 %v2994_v37, %v516_v23  ;;  %v850_v15 = vpack.c.bf16 %v554_v40, %v554_v40 }
 0x214   :  { %v2599_v34 = vpop.eup %2598  ;;  %2612 = vrsqrt.f32 %v491_v21  ;;  %v567_v27 = vpack.c.bf16 %v553_v25, %v3019_v24  ;;  %v535_v36 = vmul.f32 %v2994_v37, %v515_v57  ;;  %v869_v25 = vunpack.c.l.b16 %v849_v8  ;;  %v2562_v8 = vld [vmem:[%s3609_s2 + $0x88] sm:$0xff]  }
 0x215   :  { %v2601_v58 = vpop.eup %2600  ;;  %v493_v38 = vadd.f32 1e-05, %v477_v31  ;;  %v518_v46 = vmul.f32 %v2599_v34, %v2912_v33  ;;  %v556_v35 = vadd.f32 %v3002_v59, %v536_v42  ;;  %v870_v34 = vunpack.c.l.b16 %v850_v15 }
 0x216   :  { %2401 = vmatmul.mubr.msk.bf16.vlgmr.msra.gmra.mxu1 %vm177_vm0, %v567_v27  ;;  %2425 = vmatmul.mubr.msk.bf16.vlgmr.msra.gmra.mxu0 %vm177_vm0, %v567_v27  ;;  %v555_v29 = vadd.f32 %v3002_v59, %v535_v36  ;;  %v517_v44 = vmul.f32 %v2601_v58, %v2909_v43  ;;  %v848_v58 = vpack.c.bf16 %v3007_v3, %v3007_v3 }
 0x217   :  { %2614 = vrsqrt.f32 %v493_v38  ;;  %2441 = vmatpush3.bf16.msra.mxu1 %v2556_v32  ;;  %v538_v61 = vmul.f32 %v2994_v37, %v518_v46  ;;  %v851_v20 = vpack.c.bf16 %v556_v35, %v556_v35 }
 0x218   :  { %v2603_v50 = vpop.eup %2602  ;;  %v568_v52 = vpack.c.bf16 %v555_v29, %v554_v40  ;;  %2442 = vmatprep.subr.bf16.mxu1 %v2690_v48  ;;  %v537_v4 = vmul.f32 %v2994_v37, %v517_v44  ;;  %v876_v44 = vrot.slane %v869_v25, 7 }
 0x219   :  { %v2605_v54 = vpop.eup %2604  ;;  %v520_v60 = vmul.f32 %v2603_v50, %v2921_v55  ;;  %v871_v38 = vunpack.c.l.b16 %v851_v20 }
 0x21a   :  { %2404 = vmatprep.mubr.msk.bf16.mxu1 %vm177_vm0, %v568_v52  ;;  %2428 = vmatprep.mubr.msk.bf16.mxu0 %vm177_vm0, %v568_v52  ;;  %v557_v43 = vadd.f32 %v3002_v59, %v537_v4  ;;  %v519_v33 = vmul.f32 %v2605_v54, %v2924_v56  ;;  %v558_v56 = vadd.f32 %v3002_v59, %v538_v61  ;;  %v879_v52 = vrot.slane %v870_v34, 6 }
 0x21b   :  { %2443 = vmatpush3.bf16.msra.mxu1 %v2557_v49  ;;  %v540_v62 = vmul.f32 %v2994_v37, %v520_v60  ;;  %v882_v54 = vrot.slane %v871_v38, 5 }
 0x21c   :  { %v2607_v0 = vpop.eup %2606  ;;  %v569_v10 = vpack.c.bf16 %v557_v43, %v556_v35  ;;  %v539_v55 = vmul.f32 %v2994_v37, %v519_v33  ;;  %2444 = vmatprep.subr.bf16.mxu1 %v2690_v48  ;;  %v852_v23 = vpack.c.bf16 %v558_v56, %v558_v56 }
 0x21d   :  { %v2609_v1 = vpop.eup %2608  ;;  %v522_v2 = vmul.f32 %v2607_v0, %v2936_v45  ;;  %v560_v11 = vadd.f32 %v3002_v59, %v540_v62  ;;  %v2559_v45 = vld [vmem:[%s3609_s2 + $0x40] sm:$0xff]  }
 0x21e   :  { %2405 = vmatmul.mubr.msk.bf16.gmra.mxu1 %vm177_vm0, %v569_v10  ;;  %2429 = vmatmul.mubr.msk.bf16.gmra.mxu0 %vm177_vm0, %v569_v10  ;;  %v559_v6 = vadd.f32 %v3002_v59, %v539_v55  ;;  %v521_v7 = vmul.f32 %v2609_v1, %v2933_v5 }
 0x21f   :  { %2445 = vmatpush3.bf16.msra.mxu1 %v2558_v63  ;;  %v542_v12 = vmul.f32 %v2994_v37, %v522_v2  ;;  %v853_v57 = vpack.c.bf16 %v560_v11, %v560_v11 }
 0x220   :  { %v2611_v13 = vpop.eup %2610  ;;  %v570_v18 = vpack.c.bf16 %v559_v6, %v558_v56  ;;  %v541_v47 = vmul.f32 %v2994_v37, %v521_v7  ;;  %2446 = vmatprep.subr.bf16.mxu1 %v2690_v48  ;;  %v2560_v6 = vld [vmem:[%s3609_s2 + $0x98] sm:$0xff]   ;;  %v2561_v7 = vld [vmem:[%s3609_s2 + $0x90] sm:$0xff]  }
 0x221   :  { %v2613_v5 = vpop.eup %2612  ;;  %v562_v21 = vadd.f32 %v3002_v59, %v542_v12  ;;  %v524_v22 = vmul.f32 %v2611_v13, %v2945_v16  ;;  %v873_v46 = vunpack.c.l.b16 %v853_v57  ;;  %v970_v57 = vlaneseq }
 0x222   :  { %2408 = vmatprep.mubr.msk.bf16.mxu1 %vm177_vm0, %v570_v18  ;;  %2432 = vmatprep.mubr.msk.bf16.mxu0 %vm177_vm0, %v570_v18  ;;  %v561_v9 = vadd.f32 %v3002_v59, %v541_v47  ;;  %v523_v24 = vmul.f32 %v2613_v5, %v2948_v19  ;;  %v872_v19 = vunpack.c.l.b16 %v852_v23 }
 0x223   :  { %v544_v31 = vmul.f32 %v2994_v37, %v524_v22  ;;  %2447 = vmatpush3.bf16.msra.mxu1 %v2559_v45  ;;  %v854_v16 = vpack.c.bf16 %v562_v21, %v562_v21 }
 0x224   :  { %v2615_v32 = vpop.eup %2614  ;;  %v571_v27 = vpack.c.bf16 %v561_v9, %v560_v11  ;;  %v543_v36 = vmul.f32 %v2994_v37, %v523_v24  ;;  %v885_v43 = vrot.slane %v872_v19, 4  ;;  %2452 = vmatprep.subr.bf16.mxu1 %v2560_v6  ;;  %v2563_v11 = vld [vmem:[%s3609_s2 + $0x80] sm:$0xff]   ;;  %v2692_v24 = vmov 1966171168  }
 0x225   :  { %v525_v40 = vmul.f32 %v2615_v32, %v2957_v26  ;;  %v564_v42 = vadd.f32 %v3002_v59, %v544_v31  ;;  %v874_v4 = vunpack.c.l.b16 %v854_v16  ;;  %v868_v26 = vunpack.c.l.b16 %v848_v58  ;;  %v2244_v58 = vld [vmem:[%s3615_s8 + $0x2] ss:$0 sm:$0xff] }
 0x226   :  { %2409 = vmatmul.mubr.msk.bf16.gmra.mxu1 %vm177_vm0, %v571_v27  ;;  %2433 = vmatmul.mubr.msk.bf16.gmra.mxu0 %vm177_vm0, %v571_v27  ;;  %v563_v29 = vadd.f32 %v3002_v59, %v543_v36  ;;  %v968_v25 = vunpack.c.l.s4 %v2692_v24  ;;  %v971_v27 = vshrl.u32 %v970_v57, 7 }
 0x227   :  { %v545_v49 = vmul.f32 %v2994_v37, %v525_v40  ;;  %v855_v50 = vpack.c.bf16 %v564_v42, %v564_v42  ;;  %v878_v33 = vsel %vm877_vm1, %v876_v44, %v868_v26  ;;  %v888_v37 = vrot.slane %v873_v46, 3 }
 0x228   :  { %v572_v3 = vpack.c.bf16 %v563_v29, %v562_v21  ;;  %v881_v62 = vsel %vm880_vm2, %v879_v52, %v878_v33  ;;  %v891_v63 = vrot.slane %v874_v4, 2  ;;  %v969_v34 = vunpack.c.0.s8 %v968_v25 }
 0x229   :  { %v565_v35 = vadd.f32 %v3002_v59, %v545_v49  ;;  %v875_v60 = vunpack.c.l.b16 %v855_v50  ;;  %v884_v0 = vsel %vm883_vm3, %v882_v54, %v881_v62  ;;  %v1017_v46 = vsub.s32 0, %v971_v27 }
 0x22a   :  { %2412 = vmatprep.mubr.msk.bf16.mxu1 %vm177_vm0, %v572_v3  ;;  %2436 = vmatprep.mubr.msk.bf16.mxu0 %vm177_vm0, %v572_v3  ;;  %v887_v10 = vsel %vm886_vm4, %v885_v43, %v884_v0  ;;  %v972_v38 = vsub.s32 %v969_v34, %v971_v27  ;;  %v2218_v3 = vld [vmem:[%s3615_s8] ss:$0 sm:$0xff] }
 0x22b   :  { %v573_v61 = vpack.c.bf16 %v565_v35, %v564_v42  ;;  %v894_v59 = vrot.slane %v875_v60, 1  ;;  %v890_v55 = vsel %vm889_vm5, %v888_v37, %v887_v10 }
 0x22c   :  { %v893_v1 = vsel %vm892_vm6, %v891_v63, %v890_v55 }
 0x22d   :  { %v896_v2 = vsel %vm895_vm7, %v894_v59, %v893_v1 }
 0x22e   :  { %2413 = vmatmul.mubr.msk.bf16.gmra.mxu1 %vm177_vm0, %v573_v61  ;;  %2437 = vmatmul.mubr.msk.bf16.gmra.mxu0 %vm177_vm0, %v573_v61  ;;  %v897_v56 = vpack.c.b16 %v896_v2, %v896_v2 }
 0x22f   :  { %2448 = vmatprep.mubr.msk.bf16.mxu1 %vm2691_vm8, %v2690_v48  ;;  %2484 = vmatprep.mubr.msk.bf16.mxu0 %vm2691_vm8, %v2690_v48 }
 0x236   :  { %2449 = vmatmul.mubr.msk.bf16.vlgmr.msra.gmra.mxu1 %vm177_vm0, %v897_v56 }
 0x237   :  { %2453 = vmatpush3.bf16.msra.mxu1 %v2560_v6 }
 0x238   :  { %2454 = vmatprep.subr.bf16.mxu1 %v2561_v7 }
 0x23b   :  { %2455 = vmatpush3.bf16.msra.mxu1 %v2561_v7 }
 0x23c   :  { %2456 = vmatprep.subr.bf16.mxu1 %v2562_v8 }
 0x23f   :  { %2457 = vmatpush3.bf16.msra.mxu1 %v2562_v8 }
 0x240   :  { %2458 = vmatprep.subr.bf16.mxu1 %v2563_v11 }
 0x243   :  { %2459 = vmatpush3.bf16.msra.mxu1 %v2563_v11 }
 0x244   :  { %2500 = vmatprep.subr.bf16.mxu1 %v2690_v48 }
 0x2d6   :  { %v2402_v12 = vpop.f32.mrf.mxu1 }
 0x2d7   :  { %v669_v37 = vadd.f32 %v2402_v12, %v2218_v3 }
 0x2d8   :  { %v660_v45 = vpop.f32.mrf.mxu1 }
 0x2d9   :  { %v661_v60 = vadd.f32 %v2218_v3, %v660_v45 }
 0x2da   :  { %v2403_v13 = vpop.f32.mrf.mxu1 }
 0x2db   :  { %v672_v61 = vadd.f32 %v2403_v13, %v2218_v3 }
 0x2dc   :  { %v663_v15 = vpop.f32.mrf.mxu1 }
 0x2dd   :  { %v664_v43 = vadd.f32 %v2218_v3, %v663_v15 }
 0x2de   :  { %v2406_v18 = vpop.f32.mrf.mxu1 }
 0x2df   :  { %v685_v15 = vadd.f32 %v2406_v18, %v2218_v3 }
 0x2e0   :  { %v676_v47 = vpop.f32.mrf.mxu1 }
 0x2e1   :  { %v677_v62 = vadd.f32 %v2218_v3, %v676_v47 }
 0x2e2   :  { %v2407_v5 = vpop.f32.mrf.mxu1 }
 0x2e3   :  { %v688_v47 = vadd.f32 %v2407_v5, %v2218_v3 }
 0x2e4   :  { %v679_v20 = vpop.f32.mrf.mxu1 }
 0x2e5   :  { %v680_v1 = vadd.f32 %v2218_v3, %v679_v20 }
 0x2e6   :  { %v3114_v21 = vpop.f32.mrf.mxu1 }
 0x2e8   :  { %v692_v22 = vpop.f32.mrf.mxu1 }
 0x2e9   :  { %v693_v57 = vadd.f32 %v2218_v3, %v692_v22 }
 0x2ea   :  { %v3116_v23 = vpop.f32.mrf.mxu1 }
 0x2eb   :  { %v704_v18 = vadd.f32 %v3116_v23, %v2218_v3 }
 0x2ec   :  { %v695_v9 = vpop.f32.mrf.mxu1 }
 0x2ed   :  { %v696_v34 = vadd.f32 %v2218_v3, %v695_v9 }
 0x2ee   :  { %v3118_v31 = vpop.f32.mrf.mxu1 }
 0x2f0   :  { %v3120_v32 = vpop.f32.mrf.mxu1 }
 0x2f1   :  { %v709_v5 = vadd.f32 %v2218_v3, %v3120_v32 }
 0x2f2   :  { %v3122_v36 = vpop.f32.mrf.mxu1 }
 0x2f4   :  { %v711_v16 = vpop.f32.mrf.mxu1 }
 0x2f5   :  { %v712_v22 = vadd.f32 %v2218_v3, %v711_v16 }
 0x2f6   :  { %v959_v40 = vpop.f32.mrf.mxu1 }
 0x2f7   :  { %v960_v42 = vadd.f32 %v2244_v58, %v959_v40 }
 0x2f8   :  { %v2450_v19 = vpop.f32.mrf.mxu1 }
 0x2f9   :  { %v966_v29 = vcombine.high %v960_v42, %v960_v42  ;;  %v973_v44 = vrot.slane %v960_v42, %v972_v38 }
 0x2fa   :  { %v962_v49 = vpop.f32.mrf.mxu1 }
 0x2fb   :  { %v981_v50 = vcombine.high %v973_v44, %v973_v44  ;;  %v989_v52 = vrot.slane %v973_v44, %v972_v38  ;;  %v980_v26 = vrot.slane %v966_v29, %v972_v38 }
 0x2fc   :  { %v2451_v4 = vpop.f32.mrf.mxu1 }
 0x2fd   :  { %v1003_v54 = vrot.slane %v981_v50, %v972_v38  ;;  %v1011_v35 = vcombine.high %v989_v52, %v989_v52  ;;  %v1018_v33 = vrot.slane %v989_v52, %v1017_v46  ;;  %v996_v2 = vrot.slane %v980_v26, %v972_v38 }
 0x2fe   :  { %v982_v24 = vcombine.high %v980_v26, %v980_v26  ;;  %v701_v52 = vadd.f32 %v3114_v21, %v2218_v3  ;;  %v720_v21 = vadd.f32 %v3122_v36, %v2218_v3  ;;  %v2566_v36 = vld [vmem:[%s3609_s2 + $0x68] sm:$0xff]  }
 0x2ff   :  { %v1022_v63 = vrot.slane %v1003_v54, %v1017_v46  ;;  %v1013_v0 = vcombine.high %v1003_v54, %v1003_v54  ;;  %v1026_v59 = vrot.slane %v1011_v35, %v1017_v46  ;;  %v1055_v10 = vmul.f32 %v1018_v33, %v661_v60 }
 0x300   :  { %v1056_v55 = vmul.f32 %v1018_v33, %v664_v43  ;;  %v1034_v12 = vrot.slane %v996_v2, %v1017_v46  ;;  %v1010_v20 = vrot.slane %v982_v24, %v972_v38  ;;  %v1012_v40 = vcombine.high %v996_v2, %v996_v2 }
 0x301   :  { %v1057_v56 = vmul.f32 %v1022_v63, %v669_v37  ;;  %v1058_v6 = vmul.f32 %v1022_v63, %v672_v61  ;;  %v1059_v8 = vmul.f32 %v1026_v59, %v677_v62  ;;  %v1060_v11 = vmul.f32 %v1026_v59, %v680_v1  ;;  %v3164_v61 = vld [vmem:[%s3614_s7] sm:$0xff]  ;;  %v3169_v63 = vld [vmem:[%s3614_s7 + $0x8] sm:$0xff] }
 0x302   :  { %v1071_v7 = vpack.c.bf16 %v1056_v55, %v1055_v10  ;;  %v1030_v25 = vrot.slane %v1013_v0, %v1017_v46  ;;  %v1063_v42 = vmul.f32 %v1034_v12, %v693_v57  ;;  %v1064_v19 = vmul.f32 %v1034_v12, %v696_v34  ;;  %v3194_v34 = vpop.f32.mrf.mxu0 }
 0x303   :  { %v1072_v45 = vpack.c.bf16 %v1058_v6, %v1057_v56  ;;  %v1073_v13 = vpack.c.bf16 %v1060_v11, %v1059_v8  ;;  %v1038_v29 = vrot.slane %v1010_v20, %v1017_v46  ;;  %v1042_v49 = vrot.slane %v1012_v40, %v1017_v46 }
 0x304   :  { %2460 = vmatprep.mubr.msk.bf16.mxu1 %vm177_vm0, %v1071_v7  ;;  %v1061_v27 = vmul.f32 %v1030_v25, %v685_v15  ;;  %v1062_v58 = vmul.f32 %v1030_v25, %v688_v47  ;;  %v1075_v50 = vpack.c.bf16 %v1064_v19, %v1063_v42  ;;  %v1014_v9 = vcombine.high %v1010_v20, %v1010_v20 }
 0x305   :  { %2461 = vmatmul.mubr.msk.bf16.vlgmr.msra.gmra.mxu1 %vm177_vm0, %v1072_v45  ;;  %v1065_v38 = vmul.f32 %v1038_v29, %v701_v52  ;;  %v1066_v4 = vmul.f32 %v1038_v29, %v704_v18  ;;  %v1067_v26 = vmul.f32 %v1042_v49, %v709_v5  ;;  %v1068_v54 = vmul.f32 %v1042_v49, %v712_v22  ;;  %v3209_v5 = vpop.f32.mrf.mxu0 }
 0x306   :  { %2464 = vmatprep.mubr.msk.bf16.mxu1 %vm177_vm0, %v1073_v13  ;;  %v1074_v44 = vpack.c.bf16 %v1062_v58, %v1061_v27  ;;  %v1046_v60 = vrot.slane %v1014_v9, %v1017_v46  ;;  %v717_v33 = vadd.f32 %v3118_v31, %v2218_v3  ;;  %v2564_v46 = vld [vmem:[%s3609_s2 + $0x78] sm:$0xff]   ;;  %v2565_v31 = vld [vmem:[%s3609_s2 + $0x70] sm:$0xff]   ;;  %v2567_v3 = vld [vmem:[%s3609_s2 + $0x60] sm:$0xff]  }
 0x307   :  { %v1076_v35 = vpack.c.bf16 %v1066_v4, %v1065_v38  ;;  %v1077_v43 = vpack.c.bf16 %v1068_v54, %v1067_v26  ;;  %2477 = vmatpush3.bf16.msra.mxu0 %v2564_v46 }
 0x308   :  { %v1069_v23 = vmul.f32 %v1046_v60, %v717_v33  ;;  %v1070_v32 = vmul.f32 %v1046_v60, %v720_v21  ;;  %2478 = vmatprep.subr.bf16.mxu0 %v2690_v48 }
 0x30a   :  { %v1078_v16 = vpack.c.bf16 %v1070_v32, %v1069_v23  ;;  %v3218_v23 = vpop.f32.mrf.mxu0 }
 0x30b   :  { %2479 = vmatpush3.bf16.msra.mxu0 %v2565_v31 }
 0x30c   :  { %2480 = vmatprep.subr.bf16.mxu0 %v2690_v48 }
 0x30d   :  { %2465 = vmatmul.mubr.msk.bf16.gmra.mxu1 %vm177_vm0, %v1074_v44 }
 0x30e   :  { %2468 = vmatprep.mubr.msk.bf16.mxu1 %vm177_vm0, %v1075_v50 }
 0x30f   :  { %2481 = vmatpush3.bf16.msra.mxu0 %v2566_v36 }
 0x310   :  { %2482 = vmatprep.subr.bf16.mxu0 %v2690_v48 }
 0x313   :  { %2483 = vmatpush3.bf16.msra.mxu0 %v2567_v3 }
 0x314   :  { %2488 = vmatprep.subr.bf16.mxu0 %v2690_v48 }
 0x315   :  { %2469 = vmatmul.mubr.msk.bf16.gmra.mxu1 %vm177_vm0, %v1076_v35 }
 0x316   :  { %2472 = vmatprep.mubr.msk.bf16.mxu1 %vm177_vm0, %v1077_v43 }
 0x31d   :  { %2473 = vmatmul.mubr.msk.bf16.gmra.mxu1 %vm177_vm0, %v1078_v16 }
 0x31e   :  { %2516 = vmatprep.mubr.msk.bf16.mxu1 %vm2691_vm8, %v2690_v48 }
 0x3c5   :  { %v2462_v37 = vpop.f32.mrf.mxu1 }
 0x3c6   :  { %v3172_v0 = vadd.f32 %v2462_v37, %v3164_v61 }
 0x3c7   :  { %v1161_v62 = vpop.f32.mrf.mxu1 }
 0x3c8   :  { %v3175_v10 = vadd.f32 %v3164_v61, %v1161_v62  ;;  %v1251_v2 = vsel %vm177_vm0, %v3172_v0, -inf }
 0x3c9   :  { %v2463_v59 = vpop.f32.mrf.mxu1 }
 0x3ca   :  { %v3178_v55 = vadd.f32 %v2463_v59, %v3169_v63  ;;  %v1242_v11 = vsel %vm177_vm0, %v3175_v10, -inf }
 0x3cb   :  { %v1164_v1 = vpop.f32.mrf.mxu1 }
 0x3cc   :  { %v1252_v56 = vsel %vm177_vm0, %v3178_v55, -inf  ;;  %v3185_v6 = vadd.f32 %v3169_v63, %v1164_v1 }
 0x3cd   :  { %v1253_v7 = vmax.f32 %v1251_v2, %v1252_v56  ;;  %v2466_v8 = vpop.f32.mrf.mxu1  ;;  %v3233_v56 = vpop.f32.mrf.mxu0 }
 0x3ce   :  { %v1243_v24 = vsel %vm177_vm0, %v3185_v6, -inf  ;;  %v3192_v13 = vadd.f32 %v2466_v8, %v3164_v61 }
 0x3cf   :  { %v1254_v25 = vrot.slane %v1253_v7, 4  ;;  %v1244_v45 = vmax.f32 %v1242_v11, %v1243_v24  ;;  %v1177_v12 = vpop.f32.mrf.mxu1 }
 0x3d0   :  { %v3197_v20 = vadd.f32 %v3164_v61, %v1177_v12  ;;  %v1269_v19 = vsel %vm177_vm0, %v3192_v13, -inf }
 0x3d1   :  { %v1255_v15 = vmax.f32 %v1253_v7, %v1254_v25  ;;  %v1245_v47 = vrot.slane %v1244_v45, 4  ;;  %v2467_v57 = vpop.f32.mrf.mxu1 }
 0x3d2   :  { %v3200_v27 = vadd.f32 %v2467_v57, %v3169_v63  ;;  %v1260_v22 = vsel %vm177_vm0, %v3197_v20, -inf }
 0x3d3   :  { %v1256_v58 = vrot.slane %v1255_v15, 2  ;;  %v1246_v40 = vmax.f32 %v1244_v45, %v1245_v47  ;;  %v1180_v42 = vpop.f32.mrf.mxu1 }
 0x3d4   :  { %v1270_v29 = vsel %vm177_vm0, %v3200_v27, -inf  ;;  %v3207_v44 = vadd.f32 %v3169_v63, %v1180_v42  ;;  %v3240_v42 = vpop.f32.mrf.mxu0 }
 0x3d5   :  { %v1257_v49 = vmax.f32 %v1255_v15, %v1256_v58  ;;  %v1247_v50 = vrot.slane %v1246_v40, 2  ;;  %v1271_v52 = vmax.f32 %v1269_v19, %v1270_v29  ;;  %v2470_v18 = vpop.f32.mrf.mxu1 }
 0x3d6   :  { %v1261_v9 = vsel %vm177_vm0, %v3207_v44, -inf  ;;  %v3216_v54 = vadd.f32 %v2470_v18, %v3164_v61 }
 0x3d7   :  { %v1272_v38 = vrot.slane %v1271_v52, 4  ;;  %v1262_v4 = vmax.f32 %v1260_v22, %v1261_v9  ;;  %v1193_v26 = vpop.f32.mrf.mxu1  ;;  %v1258_v35 = vrot.slane %v1257_v49, 1  ;;  %v1248_v60 = vmax.f32 %v1246_v40, %v1247_v50 }
 0x3d8   :  { %v3221_v32 = vadd.f32 %v3164_v61, %v1193_v26  ;;  %v1287_v1 = vsel %vm177_vm0, %v3216_v54, -inf  ;;  %v3246_v26 = vpop.f32.mrf.mxu0 }
 0x3d9   :  { %v1273_v43 = vmax.f32 %v1271_v52, %v1272_v38  ;;  %v1263_v33 = vrot.slane %v1262_v4, 4  ;;  %v2471_v21 = vpop.f32.mrf.mxu1  ;;  %v1259_v62 = vmax.f32 %v1257_v49, %v1258_v35  ;;  %v1249_v59 = vrot.slane %v1248_v60, 1 }
 0x3da   :  { %v3224_v16 = vadd.f32 %v2471_v21, %v3169_v63  ;;  %v1278_v8 = vsel %vm177_vm0, %v3221_v32, -inf }
 0x3db   :  { %v1274_v46 = vrot.slane %v1273_v43, 2  ;;  %v1196_v31 = vpop.f32.mrf.mxu1  ;;  %v1264_v36 = vmax.f32 %v1262_v4, %v1263_v33  ;;  %v1316_v57 = vsub.f32 %v3172_v0, %v1259_v62  ;;  %v1250_v19 = vmax.f32 %v1248_v60, %v1249_v59 }
 0x3dc   :  { %v1288_v3 = vsel %vm177_vm0, %v3224_v16, -inf  ;;  %v3229_v37 = vadd.f32 %v3169_v63, %v1196_v31  ;;  %v1317_v50 = vsub.f32 %v3178_v55, %v1259_v62 }
 0x3dd   :  { %v2474_v2 = vpop.f32.mrf.mxu1  ;;  %v1265_v7 = vrot.slane %v1264_v36, 2  ;;  %v1289_v11 = vmax.f32 %v1287_v1, %v1288_v3  ;;  %v1275_v25 = vmax.f32 %v1273_v43, %v1274_v46  ;;  %v1334_v4 = vmul.f32 1.442695, %v1316_v57  ;;  %v3257_v3 = vpop.f32.mrf.mxu0 }
 0x3de   :  { %v1279_v24 = vsel %vm177_vm0, %v3229_v37, -inf  ;;  %v1314_v0 = vsub.f32 %v3175_v10, %v1250_v19  ;;  %v3250_v43 = vadd.f32 %v2474_v2, %v3164_v61  ;;  %v1336_v60 = vmul.f32 1.442695, %v1317_v50 }
 0x3df   :  { %v1280_v45 = vmax.f32 %v1278_v8, %v1279_v24  ;;  %v1209_v12 = vpop.f32.mrf.mxu1  ;;  %v1266_v15 = vmax.f32 %v1264_v36, %v1265_v7  ;;  %v1290_v47 = vrot.slane %v1289_v11, 4  ;;  %v1276_v52 = vrot.slane %v1275_v25, 1  ;;  %v3263_v24 = vpop.f32.mrf.mxu0 }
 0x3e0   :  { %v1315_v33 = vsub.f32 %v3185_v6, %v1250_v19  ;;  %2616 = vpow2.f32 %v1334_v4  ;;  %v1330_v10 = vmul.f32 1.442695, %v1314_v0  ;;  %v1305_v1 = vsel %vm177_vm0, %v3250_v43, -inf }
 0x3e1   :  { %v1281_v58 = vrot.slane %v1280_v45, 4  ;;  %v2475_v40 = vpop.f32.mrf.mxu1  ;;  %v1267_v29 = vrot.slane %v1266_v15, 1  ;;  %v1291_v49 = vmax.f32 %v1289_v11, %v1290_v47  ;;  %v1277_v55 = vmax.f32 %v1275_v25, %v1276_v52 }
 0x3e2   :  { %v3244_v38 = vadd.f32 %v2475_v40, %v3169_v63  ;;  %2618 = vpow2.f32 %v1336_v60  ;;  %v1332_v6 = vmul.f32 1.442695, %v1315_v33 }
 0x3e3   :  { %v1282_v18 = vmax.f32 %v1280_v45, %v1281_v58  ;;  %v1268_v22 = vmax.f32 %v1266_v15, %v1267_v29  ;;  %v1292_v9 = vrot.slane %v1291_v49, 2  ;;  %v1320_v2 = vsub.f32 %v3192_v13, %v1277_v55  ;;  %v1212_v57 = vpop.f32.mrf.mxu1  ;;  %v3265_v58 = vpop.f32.mrf.mxu0 }
 0x3e4   :  { %v1306_v31 = vsel %vm177_vm0, %v3244_v38, -inf  ;;  %2620 = vpow2.f32 %v1330_v10  ;;  %v3270_v29 = vadd.f32 %v3169_v63, %v1212_v57 }
 0x3e5   :  { %v1283_v35 = vrot.slane %v1282_v18, 2  ;;  %v1293_v21 = vmax.f32 %v1291_v49, %v1292_v9  ;;  %v1318_v46 = vsub.f32 %v3197_v20, %v1268_v22  ;;  %v1319_v36 = vsub.f32 %v3207_v44, %v1268_v22  ;;  %v817_v52 = vpop.f32.mrf.mxu0 }
 0x3e6   :  { %v1307_v7 = vmax.f32 %v1305_v1, %v1306_v31  ;;  %v1321_v20 = vsub.f32 %v3200_v27, %v1277_v55  ;;  %2622 = vpow2.f32 %v1332_v6  ;;  %v1342_v45 = vmul.f32 1.442695, %v1320_v2 }
 0x3e7   :  { %v1294_v62 = vrot.slane %v1293_v21, 1  ;;  %v1284_v59 = vmax.f32 %v1282_v18, %v1283_v35  ;;  %v1338_v8 = vmul.f32 1.442695, %v1318_v46  ;;  %v1340_v11 = vmul.f32 1.442695, %v1319_v36  ;;  %v2435_v35 = vpop.f32.mrf.mxu0 }
 0x3e8   :  { %v1308_v15 = vrot.slane %v1307_v7, 4  ;;  %v1344_v47 = vmul.f32 1.442695, %v1321_v20  ;;  %v3273_v49 = vadd.f32 %v3164_v61, %v1209_v12 }
 0x3e9   :  { %v1295_v44 = vmax.f32 %v1293_v21, %v1294_v62  ;;  %v1285_v25 = vrot.slane %v1284_v59, 1  ;;  %2624 = vpow2.f32 %v1338_v8  ;;  %v820_v62 = vpop.f32.mrf.mxu0 }
 0x3ea   :  { %2626 = vpow2.f32 %v1340_v11  ;;  %v1309_v19 = vmax.f32 %v1307_v7, %v1308_v15  ;;  %v1296_v63 = vsel %vm177_vm0, %v3273_v49, -inf }
 0x3eb   :  { %v1324_v13 = vsub.f32 %v3216_v54, %v1295_v44  ;;  %v1286_v40 = vmax.f32 %v1284_v59, %v1285_v25  ;;  %2628 = vpow2.f32 %v1342_v45  ;;  %v1325_v27 = vsub.f32 %v3224_v16, %v1295_v44  ;;  %v2438_v15 = vpop.f32.mrf.mxu0 }
 0x3ec   :  { %2630 = vpow2.f32 %v1344_v47  ;;  %v1310_v4 = vrot.slane %v1309_v19, 2  ;;  %v1297_v54 = vsel %vm177_vm0, %v3270_v29, -inf }
 0x3ed   :  { %v2617_v50 = vpop.eup %2616  ;;  %v1350_v18 = vmul.f32 1.442695, %v1324_v13  ;;  %v1322_v22 = vsub.f32 %v3221_v32, %v1286_v40  ;;  %v1352_v9 = vmul.f32 1.442695, %v1325_v27  ;;  %v1323_v16 = vsub.f32 %v3229_v37, %v1286_v40  ;;  %v3284_v32 = vld [vmem:[%s3615_s8 + $0x1] ss:$0 sm:$0xff] }
 0x3ee   :  { %v1298_v12 = vmax.f32 %v1296_v63, %v1297_v54  ;;  %v1371_v33 = vsel %vm177_vm0, %v2617_v50, 0.0  ;;  %v1311_v21 = vmax.f32 %v1309_v19, %v1310_v4  ;;  %v794_v10 = vadd.f32 %v3194_v34, %v3284_v32  ;;  %v833_v54 = vpop.f32.mrf.mxu0 }
 0x3ef   :  { %v2619_v0 = vpop.eup %2618  ;;  %2632 = vpow2.f32 %v1350_v18  ;;  %v1346_v61 = vmul.f32 1.442695, %v1322_v22  ;;  %v1348_v31 = vmul.f32 1.442695, %v1323_v16  ;;  %v797_v8 = vadd.f32 %v3218_v23, %v3284_v32 }
 0x3f0   :  { %v1372_v55 = vsel %vm177_vm0, %v2619_v0, 0.0  ;;  %2634 = vpow2.f32 %v1352_v9  ;;  %v1299_v1 = vrot.slane %v1298_v12, 4  ;;  %v1312_v7 = vrot.slane %v1311_v21, 1 }
 0x3f1   :  { %v2621_v60 = vpop.eup %2620  ;;  %v1373_v59 = vadd.f32 %v1372_v55, %v1371_v33  ;;  %2636 = vpow2.f32 %v1346_v61  ;;  %v1436_v11 = vmul.f32 %v2617_v50, %v794_v10  ;;  %v1437_v57 = vmul.f32 %v2619_v0, %v797_v8 }
 0x3f2   :  { %v1362_v6 = vsel %vm177_vm0, %v2621_v60, 0.0  ;;  %2638 = vpow2.f32 %v1348_v31  ;;  %v1313_v45 = vmax.f32 %v1311_v21, %v1312_v7  ;;  %v1300_v40 = vmax.f32 %v1298_v12, %v1299_v1 }
 0x3f3   :  { %v2623_v37 = vpop.eup %2622  ;;  %v1374_v47 = vrot.slane %v1373_v59, 4  ;;  %v786_v27 = vadd.f32 %v3284_v32, %v3209_v5  ;;  %v789_v23 = vadd.f32 %v3284_v32, %v3233_v56  ;;  %v810_v19 = vadd.f32 %v3240_v42, %v3284_v32 }
 0x3f4   :  { %v1363_v2 = vsel %vm177_vm0, %v2623_v37, 0.0  ;;  %v802_v50 = vadd.f32 %v3284_v32, %v3246_v26  ;;  %v813_v4 = vadd.f32 %v3257_v3, %v3284_v32  ;;  %v805_v5 = vadd.f32 %v3284_v32, %v3263_v24 }
 0x3f5   :  { %v1364_v13 = vadd.f32 %v1363_v2, %v1362_v6  ;;  %v1459_v56 = vsel %vm177_vm0, %v1436_v11, 0.0  ;;  %v1328_v42 = vsub.f32 %v3250_v43, %v1313_v45  ;;  %v1375_v0 = vadd.f32 %v1374_v47, %v1373_v59 }
 0x3f6   :  { %v3288_v46 = vpop.eup %2624  ;;  %v1460_v26 = vsel %vm177_vm0, %v1437_v57, 0.0  ;;  %v1301_v63 = vrot.slane %v1300_v40, 2  ;;  %v3329_v12 = vadd.f32 %v3265_v58, %v3284_v32  ;;  %v818_v3 = vadd.f32 %v3284_v32, %v817_v52  ;;  %v2439_v52 = vpop.f32.mrf.mxu0 }
 0x3f7   :  { %v3290_v36 = vpop.eup %2626  ;;  %v1380_v34 = vsel %vm177_vm0, %v3288_v46, 0.0  ;;  %v1365_v16 = vrot.slane %v1364_v13, 4  ;;  %v1329_v24 = vsub.f32 %v3244_v38, %v1313_v45  ;;  %v3336_v43 = vadd.f32 %v2435_v35, %v3284_v32 }
 0x3f8   :  { %v3296_v20 = vpop.eup %2628  ;;  %v1381_v25 = vsel %vm177_vm0, %v3290_v36, 0.0  ;;  %v821_v21 = vadd.f32 %v3284_v32, %v820_v62  ;;  %v1434_v31 = vmul.f32 %v2621_v60, %v786_v27  ;;  %v1461_v59 = vadd.f32 %v1460_v26, %v1459_v56 }
 0x3f9   :  { %v3300_v44 = vpop.eup %2630  ;;  %v1389_v18 = vsel %vm177_vm0, %v3296_v20, 0.0  ;;  %v1382_v9 = vadd.f32 %v1381_v25, %v1380_v34  ;;  %v1435_v1 = vmul.f32 %v2623_v37, %v789_v23  ;;  %v1358_v6 = vmul.f32 1.442695, %v1328_v42 }
 0x3fa   :  { %v1390_v22 = vsel %vm177_vm0, %v3300_v44, 0.0  ;;  %v1360_v2 = vmul.f32 1.442695, %v1329_v24  ;;  %v3340_v58 = vadd.f32 %v2438_v15, %v3284_v32  ;;  %v1376_v7 = vrot.slane %v1375_v0, 2 }
 0x3fb   :  { %v1391_v33 = vadd.f32 %v1390_v22, %v1389_v18  ;;  %v1383_v10 = vrot.slane %v1382_v9, 4  ;;  %v1366_v8 = vadd.f32 %v1365_v16, %v1364_v13  ;;  %v1302_v38 = vmax.f32 %v1300_v40, %v1301_v63 }
 0x3fc   :  { %v3325_v61 = vpop.eup %2632  ;;  %2640 = vpow2.f32 %v1358_v6  ;;  %v3347_v37 = vadd.f32 %v3284_v32, %v833_v54  ;;  %v3350_v45 = vadd.f32 %v2439_v52, %v3284_v32  ;;  %v1462_v15 = vrot.slane %v1461_v59, 4 }
 0x3fd   :  { %v3333_v55 = vpop.eup %2634  ;;  %v1392_v34 = vrot.slane %v1391_v33, 4  ;;  %v1407_v35 = vsel %vm177_vm0, %v3325_v61, 0.0  ;;  %v1384_v62 = vadd.f32 %v1383_v10, %v1382_v9  ;;  %2642 = vpow2.f32 %v1360_v2 }
 0x3fe   :  { %v2637_v11 = vpop.eup %2636  ;;  %v1408_v60 = vsel %vm177_vm0, %v3333_v55, 0.0  ;;  %v1303_v25 = vrot.slane %v1302_v38, 1  ;;  %v1450_v47 = vsel %vm177_vm0, %v1434_v31, 0.0  ;;  %v1451_v57 = vsel %vm177_vm0, %v1435_v1, 0.0 }
 0x3ff   :  { %v2639_v13 = vpop.eup %2638  ;;  %v1377_v40 = vadd.f32 %v1376_v7, %v1375_v0  ;;  %v1409_v27 = vadd.f32 %v1408_v60, %v1407_v35  ;;  %v1398_v23 = vsel %vm177_vm0, %v2637_v11, 0.0  ;;  %v1367_v22 = vrot.slane %v1366_v8, 2 }
 0x400   :  { %v1304_v18 = vmax.f32 %v1302_v38, %v1303_v25  ;;  %v1393_v56 = vadd.f32 %v1392_v34, %v1391_v33  ;;  %v1438_v9 = vmul.f32 %v3288_v46, %v802_v50  ;;  %v1439_v42 = vmul.f32 %v3290_v36, %v805_v5  ;;  %v836_v50 = vpop.f32.mrf.mxu0 }
 0x401   :  { %v1385_v54 = vrot.slane %v1384_v62, 2  ;;  %v1399_v26 = vsel %vm177_vm0, %v2639_v13, 0.0  ;;  %v3360_v24 = vadd.f32 %v1462_v15, %v1461_v59  ;;  %v1452_v0 = vadd.f32 %v1451_v57, %v1450_v47 }
 0x402   :  { %v1326_v16 = vsub.f32 %v3273_v49, %v1304_v18  ;;  %v1327_v63 = vsub.f32 %v3270_v29, %v1304_v18  ;;  %v1440_v31 = vmul.f32 %v3296_v20, %v810_v19  ;;  %v1400_v10 = vadd.f32 %v1399_v26, %v1398_v23 }
 0x403   :  { %v1441_v1 = vmul.f32 %v3300_v44, %v813_v4  ;;  %v1410_v33 = vrot.slane %v1409_v27, 4  ;;  %v1378_v36 = vrot.slane %v1377_v40, 1  ;;  %v1368_v5 = vadd.f32 %v1367_v22, %v1366_v8 }
 0x404   :  { %v1354_v6 = vmul.f32 1.442695, %v1326_v16  ;;  %v1356_v46 = vmul.f32 1.442695, %v1327_v63  ;;  %v1468_v2 = vsel %vm177_vm0, %v1438_v9, 0.0  ;;  %v1401_v52 = vrot.slane %v1400_v10, 4 }
 0x405   :  { %v1394_v49 = vrot.slane %v1393_v56, 2  ;;  %v1386_v7 = vadd.f32 %v1385_v54, %v1384_v62  ;;  %v1469_v29 = vsel %vm177_vm0, %v1439_v42, 0.0  ;;  %v1442_v38 = vmul.f32 %v2637_v11, %v818_v3 }
 0x406   :  { %2644 = vpow2.f32 %v1354_v6  ;;  %v1402_v59 = vadd.f32 %v1401_v52, %v1400_v10  ;;  %v1443_v20 = vmul.f32 %v2639_v13, %v821_v21  ;;  %v837_v44 = vadd.f32 %v3284_v32, %v836_v50 }
 0x407   :  { %2646 = vpow2.f32 %v1356_v46  ;;  %v1464_v19 = vrot.slane %v3360_v24, 2  ;;  %v1453_v4 = vrot.slane %v1452_v0, 4  ;;  %v1411_v34 = vadd.f32 %v1410_v33, %v1409_v27 }
 0x408   :  { %v1369_v35 = vrot.slane %v1368_v5, 1  ;;  %v1477_v8 = vsel %vm177_vm0, %v1440_v31, 0.0  ;;  %v1478_v60 = vsel %vm177_vm0, %v1441_v1, 0.0  ;;  %v1403_v25 = vrot.slane %v1402_v59, 2 }
 0x409   :  { %v2641_v62 = vpop.eup %2640  ;;  %v1379_v15 = vadd.f32 %v1378_v36, %v1377_v40  ;;  %v1395_v47 = vadd.f32 %v1394_v49, %v1393_v56  ;;  %v1470_v57 = vadd.f32 %v1469_v29, %v1468_v2  ;;  %v1444_v3 = vmul.f32 %v3325_v61, %v3329_v12 }
 0x40a   :  { %v2643_v21 = vpop.eup %2642  ;;  %v1387_v11 = vrot.slane %v1386_v7, 1  ;;  %v1486_v32 = vsel %vm177_vm0, %v1442_v38, 0.0  ;;  %v1487_v13 = vsel %vm177_vm0, %v1443_v20, 0.0  ;;  %v1425_v27 = vsel %vm177_vm0, %v2641_v62, 0.0 }
 0x40b   :  { %v1412_v23 = vrot.slane %v1411_v34, 2  ;;  %v1445_v18 = vmul.f32 %v3333_v55, %v3336_v43  ;;  %v1404_v22 = vadd.f32 %v1403_v25, %v1402_v59  ;;  %v1426_v40 = vsel %vm177_vm0, %v2643_v21, 0.0 }
 0x40c   :  { %v1370_v56 = vadd.f32 %v1369_v35, %v1368_v5  ;;  %v1454_v9 = vadd.f32 %v1453_v4, %v1452_v0  ;;  %v1479_v42 = vadd.f32 %v1478_v60, %v1477_v8  ;;  %v1427_v54 = vadd.f32 %v1426_v40, %v1425_v27 }
 0x40d   :  { %v1471_v61 = vrot.slane %v1470_v57, 4  ;;  %v1488_v12 = vadd.f32 %v1487_v13, %v1486_v32  ;;  %v1448_v26 = vmul.f32 %v2641_v62, %v3340_v58  ;;  %v1449_v16 = vmul.f32 %v2643_v21, %v3350_v45 }
 0x40e   :  { %2648 = vrcp.f32 %v1379_v15  ;;  %v1396_v63 = vrot.slane %v1395_v47, 1  ;;  %v1388_v31 = vadd.f32 %v1387_v11, %v1386_v7  ;;  %v1428_v10 = vrot.slane %v1427_v54, 4 }
 0x40f   :  { %v1413_v1 = vadd.f32 %v1412_v23, %v1411_v34  ;;  %v1495_v55 = vsel %vm177_vm0, %v1444_v3, 0.0  ;;  %v1496_v43 = vsel %vm177_vm0, %v1445_v18, 0.0  ;;  %v1405_v33 = vrot.slane %v1404_v22, 1 }
 0x410   :  { %v1455_v6 = vrot.slane %v1454_v9, 2  ;;  %2650 = vrcp.f32 %v1370_v56  ;;  %v1480_v0 = vrot.slane %v1479_v42, 4  ;;  %v1429_v46 = vadd.f32 %v1428_v10, %v1427_v54 }
 0x411   :  { %v1472_v50 = vadd.f32 %v1471_v61, %v1470_v57  ;;  %v1489_v36 = vrot.slane %v1488_v12, 4  ;;  %v1513_v58 = vsel %vm177_vm0, %v1448_v26, 0.0  ;;  %v1514_v45 = vsel %vm177_vm0, %v1449_v16, 0.0 }
 0x412   :  { %v1397_v2 = vadd.f32 %v1396_v63, %v1395_v47  ;;  %2652 = vrcp.f32 %v1388_v31  ;;  %v1497_v52 = vadd.f32 %v1496_v43, %v1495_v55  ;;  %v1430_v49 = vrot.slane %v1429_v46, 2 }
 0x413   :  { %v2645_v5 = vpop.eup %2644  ;;  %v1414_v29 = vrot.slane %v1413_v1, 1  ;;  %v1406_v59 = vadd.f32 %v1405_v33, %v1404_v22  ;;  %v1515_v34 = vadd.f32 %v1514_v45, %v1513_v58  ;;  %v1473_v60 = vrot.slane %v1472_v50, 2 }
 0x414   :  { %v2647_v7 = vpop.eup %2646  ;;  %v1416_v38 = vsel %vm177_vm0, %v2645_v5, 0.0  ;;  %v1446_v20 = vmul.f32 %v2645_v5, %v3347_v37  ;;  %v1431_v4 = vadd.f32 %v1430_v49, %v1429_v46  ;;  %v1490_v25 = vadd.f32 %v1489_v36, %v1488_v12 }
 0x415   :  { %v1417_v35 = vsel %vm177_vm0, %v2647_v7, 0.0  ;;  %v1447_v8 = vmul.f32 %v2647_v7, %v837_v44  ;;  %v1481_v47 = vadd.f32 %v1480_v0, %v1479_v42  ;;  %v1498_v57 = vrot.slane %v1497_v52, 4 }
 0x416   :  { %v1418_v62 = vadd.f32 %v1417_v35, %v1416_v38  ;;  %v1504_v15 = vsel %vm177_vm0, %v1446_v20, 0.0  ;;  %v1432_v3 = vrot.slane %v1431_v4, 1  ;;  %2654 = vrcp.f32 %v1406_v59 }
 0x417   :  { %v1505_v21 = vsel %vm177_vm0, %v1447_v8, 0.0  ;;  %v1456_v13 = vadd.f32 %v1455_v6, %v1454_v9  ;;  %2656 = vrcp.f32 %v1397_v2  ;;  %v1415_v37 = vadd.f32 %v1414_v29, %v1413_v1 }
 0x418   :  { %v1419_v11 = vrot.slane %v1418_v62, 4  ;;  %v1506_v32 = vadd.f32 %v1505_v21, %v1504_v15  ;;  %v1516_v27 = vrot.slane %v1515_v34, 4  ;;  %v1474_v23 = vadd.f32 %v1473_v60, %v1472_v50 }
 0x419   :  { %v1491_v18 = vrot.slane %v1490_v25, 2  ;;  %v1465_v22 = vadd.f32 %v1464_v19, %v3360_v24  ;;  %v1482_v40 = vrot.slane %v1481_v47, 2  ;;  %v1499_v56 = vadd.f32 %v1498_v57, %v1497_v52 }
 0x41a   :  { %v1420_v44 = vadd.f32 %v1419_v11, %v1418_v62  ;;  %v1433_v42 = vadd.f32 %v1432_v3, %v1431_v4  ;;  %v1507_v12 = vrot.slane %v1506_v32, 4  ;;  %v1457_v26 = vrot.slane %v1456_v13, 1 }
 0x41b   :  { %v2649_v54 = vpop.eup %2648  ;;  %2658 = vrcp.f32 %v1415_v37  ;;  %v1517_v16 = vadd.f32 %v1516_v27, %v1515_v34  ;;  %v1475_v63 = vrot.slane %v1474_v23, 1  ;;  %v1492_v31 = vadd.f32 %v1491_v18, %v1490_v25 }
 0x41c   :  { %v1421_v61 = vrot.slane %v1420_v44, 2  ;;  %v1466_v1 = vrot.slane %v1465_v22, 1  ;;  %v1483_v55 = vadd.f32 %v1482_v40, %v1481_v47  ;;  %v1500_v43 = vrot.slane %v1499_v56, 2 }
 0x41d   :  { %v2651_v9 = vpop.eup %2650  ;;  %2660 = vrcp.f32 %v1433_v42  ;;  %v1508_v24 = vadd.f32 %v1507_v12, %v1506_v32  ;;  %v1458_v19 = vadd.f32 %v1457_v26, %v1456_v13  ;;  %v1518_v0 = vrot.slane %v1517_v16, 2 }
 0x41e   :  { %v1422_v10 = vadd.f32 %v1421_v61, %v1420_v44  ;;  %v1476_v46 = vadd.f32 %v1475_v63, %v1474_v23  ;;  %v1493_v50 = vrot.slane %v1492_v31, 1  ;;  %v1467_v58 = vadd.f32 %v1466_v1, %v1465_v22 }
 0x41f   :  { %v2653_v33 = vpop.eup %2652  ;;  %v1523_v45 = vmul.f32 %v2651_v9, %v1458_v19  ;;  %v1484_v5 = vrot.slane %v1483_v55, 1  ;;  %v1501_v2 = vadd.f32 %v1500_v43, %v1499_v56  ;;  %v1509_v49 = vrot.slane %v1508_v24, 2 }
 0x420   :  { %v1423_v6 = vrot.slane %v1422_v10, 1  ;;  %v1527_v52 = vmul.f32 %v2653_v33, %v1476_v46  ;;  %v1525_v29 = vmul.f32 %v2649_v54, %v1467_v58  ;;  %v1519_v59 = vadd.f32 %v1518_v0, %v1517_v16  ;;  %v2262_v0 = vld [vmem:[%s3615_s8 + $0x3] ss:$0 sm:$0xff] }
 0x421   :  { %v1494_v20 = vadd.f32 %v1493_v50, %v1492_v31  ;;  %v1538_v4 = vpack.c.bf16 %v1523_v45, %v1523_v45  ;;  %v1485_v34 = vadd.f32 %v1484_v5, %v1483_v55  ;;  %v1502_v35 = vrot.slane %v1501_v2, 1 }
 0x422   :  { %v1424_v36 = vadd.f32 %v1423_v6, %v1422_v10  ;;  %v1540_v8 = vpack.c.bf16 %v1527_v52, %v1527_v52  ;;  %v1510_v25 = vadd.f32 %v1509_v49, %v1508_v24  ;;  %v1539_v62 = vpack.c.bf16 %v1525_v29, %v1525_v29 }
 0x423   :  { %v2655_v7 = vpop.eup %2654  ;;  %v1520_v47 = vrot.slane %v1519_v59, 1  ;;  %v1558_v3 = vunpack.c.l.b16 %v1538_v4  ;;  %v1503_v21 = vadd.f32 %v1502_v35, %v1501_v2 }
 0x424   :  { %2662 = vrcp.f32 %v1424_v36  ;;  %v2657_v38 = vpop.eup %2656  ;;  %v1531_v60 = vmul.f32 %v2655_v7, %v1494_v20  ;;  %v1560_v32 = vunpack.c.l.b16 %v1540_v8  ;;  %v1511_v37 = vrot.slane %v1510_v25, 1 }
 0x425   :  { %v1529_v15 = vmul.f32 %v2657_v38, %v1485_v34  ;;  %v1559_v27 = vunpack.c.l.b16 %v1539_v62  ;;  %v1521_v18 = vadd.f32 %v1520_v47, %v1519_v59 }
 0x426   :  { %v1542_v13 = vpack.c.bf16 %v1531_v60, %v1531_v60  ;;  %v1512_v56 = vadd.f32 %v1511_v37, %v1510_v25 }
 0x427   :  { %v1541_v23 = vpack.c.bf16 %v1529_v15, %v1529_v15  ;;  %v1566_v40 = vsel %vm877_vm1, %v1559_v27, %v1558_v3 }
 0x428   :  { %v2659_v57 = vpop.eup %2658  ;;  %v1562_v42 = vunpack.c.l.b16 %v1542_v13  ;;  %v1567_v54 = vsel %vm880_vm2, %v1560_v32, %v1566_v40 }
 0x429   :  { %v1533_v44 = vmul.f32 %v2659_v57, %v1503_v21  ;;  %v1561_v12 = vunpack.c.l.b16 %v1541_v23 }
 0x42a   :  { %v2661_v11 = vpop.eup %2660 }
 0x42b   :  { %v1537_v22 = vmul.f32 %v2661_v11, %v1521_v18  ;;  %v1543_v26 = vpack.c.bf16 %v1533_v44, %v1533_v44  ;;  %v1568_v63 = vsel %vm883_vm3, %v1561_v12, %v1567_v54 }
 0x42c   :  { %v1569_v10 = vsel %vm886_vm4, %v1562_v42, %v1568_v63 }
 0x42d   :  { %v1545_v9 = vpack.c.bf16 %v1537_v22, %v1537_v22  ;;  %v1563_v1 = vunpack.c.l.b16 %v1543_v26 }
 0x42f   :  { %v1565_v43 = vunpack.c.l.b16 %v1545_v9  ;;  %v1570_v33 = vsel %vm889_vm5, %v1563_v1, %v1569_v10 }
 0x431   :  { %v2663_v61 = vpop.eup %2662 }
 0x432   :  { %v1535_v16 = vmul.f32 %v2663_v61, %v1512_v56 }
 0x434   :  { %v1544_v31 = vpack.c.bf16 %v1535_v16, %v1535_v16 }
 0x436   :  { %v1564_v55 = vunpack.c.l.b16 %v1544_v31 }
 0x438   :  { %v1571_v6 = vsel %vm892_vm6, %v1564_v55, %v1570_v33 }
 0x439   :  { %v1572_v24 = vsel %vm895_vm7, %v1565_v43, %v1571_v6 }
 0x43a   :  { %v1573_v19 = vpack.c.b16 %v1572_v24, %v1572_v24 }
 0x43c   :  { %2485 = vmatmul.mubr.msk.bf16.vlgmr.msra.gmra.mxu0 %vm177_vm0, %v1573_v19 }
 0x43d   :  { %2496 = vmatprep.mubr.msk.bf16.mxu0 %vm2691_vm8, %v2690_v48 }
 0x4fc   :  { %v1635_v46 = vpop.f32.mrf.mxu0 }
 0x4fd   :  { %v1636_v50 = vadd.f32 %v2262_v0, %v1635_v46 }
 0x4fe   :  { %v2486_v36 = vpop.f32.mrf.mxu0 }
 0x4ff   :  { %v1642_v58 = vrot.slane %v1636_v50, 1  ;;  %v1643_v45 = vrot.slane %v1636_v50, 2  ;;  %v1644_v5 = vrot.slane %v1636_v50, 3  ;;  %v1645_v2 = vrot.slane %v1636_v50, 4 }
 0x500   :  { %v1638_v52 = vpop.f32.mrf.mxu0  ;;  %v1646_v49 = vrot.slane %v1636_v50, 5  ;;  %v1647_v7 = vrot.slane %v1636_v50, 6  ;;  %v1648_v29 = vrot.slane %v1636_v50, 7  ;;  %v3418_v35 = vadd.f32 %v1636_v50, %v2806_v17 }
 0x501   :  { %v3406_v59 = vadd.f32 %v1642_v58, %v2801_v14  ;;  %v3409_v38 = vadd.f32 %v1643_v45, %v2820_v28  ;;  %v3412_v20 = vadd.f32 %v1644_v5, %v2822_v30  ;;  %v3415_v34 = vadd.f32 %v1645_v2, %v2834_v39 }
 0x502   :  { %v2487_v4 = vpop.f32.mrf.mxu0  ;;  %v3421_v8 = vadd.f32 %v1646_v49, %v2836_v41  ;;  %v3426_v28 = vadd.f32 %v1647_v7, %v2850_v51  ;;  %v3429_v30 = vadd.f32 %v1648_v29, %v2852_v53 }
 0x503   :  { %v1673_v60 = vrot.slane %v3406_v59, 7  ;;  %v1675_v14 = vrot.slane %v3409_v38, 6  ;;  %v1677_v25 = vrot.slane %v3412_v20, 5  ;;  %v1679_v41 = vrot.slane %v3415_v34, 4 }
 0x504   :  { %v1681_v15 = vrot.slane %v3421_v8, 3  ;;  %v1683_v51 = vrot.slane %v3426_v28, 2  ;;  %v1685_v57 = vrot.slane %v3429_v30, 1 }
 0x505   :  { %v1674_v39 = vsel %vm877_vm1, %v1673_v60, %v3418_v35  ;;  %v2568_v60 = vld [vmem:[%s3610_s3 + $0x18] sm:$0xff]  }
 0x506   :  { %v1676_v17 = vsel %vm880_vm2, %v1675_v14, %v1674_v39  ;;  %2489 = vmatpush3.bf16.msra.mxu0 %v2568_v60  ;;  %v2569_v14 = vld [vmem:[%s3610_s3 + $0x10] sm:$0xff]   ;;  %v2570_v39 = vld [vmem:[%s3610_s3 + $0x8] sm:$0xff]  }
 0x507   :  { %v1678_v62 = vsel %vm883_vm3, %v1677_v25, %v1676_v17  ;;  %2490 = vmatprep.subr.bf16.mxu0 %v2690_v48  ;;  %v2571_v25 = vld [vmem:[%s3610_s3] sm:$0xff]   ;;  %v2572_v17 = vld [vmem:[%s3611_s4 + $0x38] sm:$0xff]  }
 0x508   :  { %v1680_v47 = vsel %vm886_vm4, %v1679_v41, %v1678_v62  ;;  %2501 = vmatpush3.bf16.msra.mxu1 %v2572_v17  ;;  %v2573_v41 = vld [vmem:[%s3611_s4 + $0x30] sm:$0xff]  }
 0x509   :  { %v1682_v53 = vsel %vm889_vm5, %v1681_v15, %v1680_v47  ;;  %2502 = vmatprep.subr.bf16.mxu1 %v2690_v48 }
 0x50a   :  { %v1684_v3 = vsel %vm892_vm6, %v1683_v51, %v1682_v53  ;;  %2491 = vmatpush3.bf16.msra.mxu0 %v2569_v14  ;;  %v2268_v53 = vld [vmem:[%s3615_s8 + $0x7] ss:$0 sm:$0xff] }
 0x50b   :  { %v1686_v21 = vsel %vm895_vm7, %v1685_v57, %v1684_v3  ;;  %2492 = vmatprep.subr.bf16.mxu0 %v2690_v48 }
 0x50c   :  { %v1688_v11 = vsel %vm177_vm0, %v1686_v21, 0.0  ;;  %2503 = vmatpush3.bf16.msra.mxu1 %v2573_v41 }
 0x50d   :  { %1689 = vadd.xlane.f32.xlu0 %v1688_v11  ;;  %2504 = vmatprep.subr.bf16.mxu1 %v2690_v48 }
 0x50e   :  { %2493 = vmatpush3.bf16.msra.mxu0 %v2570_v39 }
 0x50f   :  { %2494 = vmatprep.subr.bf16.mxu0 %v2690_v48 }
 0x512   :  { %2495 = vmatpush3.bf16.msra.mxu0 %v2571_v25 }
 0x513   :  { %2520 = vmatprep.subr.bf16.mxu0 %v2690_v48 }
 0x596   :  { %v1690_v32 = vpop.xlane.xlu0 %1689 }
 0x597   :  { %v1691_v13 = vmul.f32 0.015625, %v1690_v32 }
 0x599   :  { %v1693_v37 = vrot.slane %v1691_v13, 1  ;;  %v1694_v27 = vrot.slane %v1691_v13, 2  ;;  %v1695_v23 = vrot.slane %v1691_v13, 3  ;;  %v1696_v18 = vrot.slane %v1691_v13, 4 }
 0x59a   :  { %v1697_v44 = vrot.slane %v1691_v13, 5  ;;  %v1698_v22 = vrot.slane %v1691_v13, 6  ;;  %v1699_v40 = vrot.slane %v1691_v13, 7  ;;  %v3446_v56 = vsub.f32 %v3418_v35, %v1691_v13 }
 0x59b   :  { %v3449_v42 = vsub.f32 %v3406_v59, %v1693_v37  ;;  %v3452_v54 = vsub.f32 %v3409_v38, %v1694_v27  ;;  %v3455_v61 = vsub.f32 %v3412_v20, %v1695_v23  ;;  %v3458_v12 = vsub.f32 %v3415_v34, %v1696_v18  ;;  %v2269_v23 = vld [vmem:[%s3615_s8 + $0x8] ss:$0 sm:$0xff] }
 0x59c   :  { %v3461_v26 = vsub.f32 %v3421_v8, %v1697_v44  ;;  %v3464_v16 = vsub.f32 %v3426_v28, %v1698_v22  ;;  %v3467_v9 = vsub.f32 %v3429_v30, %v1699_v40  ;;  %v1716_v55 = vmul.f32 %v3446_v56, %v3446_v56 }
 0x59d   :  { %v1717_v63 = vmul.f32 %v3449_v42, %v3449_v42  ;;  %v1718_v31 = vmul.f32 %v3452_v54, %v3452_v54  ;;  %v1719_v10 = vmul.f32 %v3455_v61, %v3455_v61  ;;  %v1720_v1 = vmul.f32 %v3458_v12, %v3458_v12 }
 0x59e   :  { %v1721_v43 = vmul.f32 %v3461_v26, %v3461_v26  ;;  %v1722_v24 = vmul.f32 %v3464_v16, %v3464_v16  ;;  %v1723_v19 = vmul.f32 %v3467_v9, %v3467_v9 }
 0x59f   :  { %v1732_v33 = vrot.slane %v1717_v63, 7  ;;  %v1734_v6 = vrot.slane %v1718_v31, 6  ;;  %v1736_v46 = vrot.slane %v1719_v10, 5  ;;  %v1738_v36 = vrot.slane %v1720_v1, 4 }
 0x5a0   :  { %v1740_v45 = vrot.slane %v1721_v43, 3  ;;  %v1742_v2 = vrot.slane %v1722_v24, 2  ;;  %v1744_v49 = vrot.slane %v1723_v19, 1 }
 0x5a1   :  { %v1733_v0 = vsel %vm877_vm1, %v1732_v33, %v1716_v55 }
 0x5a2   :  { %v1735_v50 = vsel %vm880_vm2, %v1734_v6, %v1733_v0 }
 0x5a3   :  { %v1737_v58 = vsel %vm883_vm3, %v1736_v46, %v1735_v50 }
 0x5a4   :  { %v1739_v5 = vsel %vm886_vm4, %v1738_v36, %v1737_v58 }
 0x5a5   :  { %v1741_v52 = vsel %vm889_vm5, %v1740_v45, %v1739_v5 }
 0x5a6   :  { %v1743_v7 = vsel %vm892_vm6, %v1742_v2, %v1741_v52 }
 0x5a7   :  { %v1745_v29 = vsel %vm895_vm7, %v1744_v49, %v1743_v7 }
 0x5a8   :  { %v1747_v4 = vsel %vm177_vm0, %v1745_v29, 0.0 }
 0x5a9   :  { %1748 = vadd.xlane.f32.xlu1 %v1747_v4 }
 0x632   :  { %v1749_v62 = vpop.xlane.xlu1 %1748 }
 0x633   :  { %v1750_v15 = vmul.f32 0.015625, %v1749_v62 }
 0x635   :  { %v1751_v47 = vadd.f32 1e-05, %v1750_v15 }
 0x637   :  { %2664 = vrsqrt.f32 %v1751_v47 }
 0x644   :  { %v2665_v51 = vpop.eup %2664 }
 0x645   :  { %v1754_v57 = vrot.slane %v2665_v51, 1  ;;  %v1755_v3 = vrot.slane %v2665_v51, 2  ;;  %v1756_v21 = vrot.slane %v2665_v51, 3  ;;  %v1757_v11 = vrot.slane %v2665_v51, 4 }
 0x646   :  { %v1758_v32 = vrot.slane %v2665_v51, 5  ;;  %v1759_v13 = vrot.slane %v2665_v51, 6  ;;  %v1760_v37 = vrot.slane %v2665_v51, 7  ;;  %v1769_v27 = vmul.f32 %v2665_v51, %v3446_v56 }
 0x647   :  { %v1770_v18 = vmul.f32 %v1754_v57, %v3449_v42  ;;  %v1771_v44 = vmul.f32 %v1755_v3, %v3452_v54  ;;  %v1772_v22 = vmul.f32 %v1756_v21, %v3455_v61  ;;  %v1773_v40 = vmul.f32 %v1757_v11, %v3458_v12 }
 0x648   :  { %v1774_v63 = vmul.f32 %v1758_v32, %v3461_v26  ;;  %v1775_v31 = vmul.f32 %v1759_v13, %v3464_v16  ;;  %v1776_v10 = vmul.f32 %v1760_v37, %v3467_v9  ;;  %v1781_v1 = vmul.f32 %v2268_v53, %v1769_v27 }
 0x649   :  { %v1782_v56 = vmul.f32 %v2268_v53, %v1770_v18  ;;  %v1783_v55 = vmul.f32 %v2268_v53, %v1771_v44  ;;  %v1784_v43 = vmul.f32 %v2268_v53, %v1772_v22  ;;  %v1785_v33 = vmul.f32 %v2268_v53, %v1773_v40  ;;  %v2575_v18 = vld [vmem:[%s3611_s4 + $0x20] sm:$0xff]   ;;  %v2576_v44 = vld [vmem:[%s3611_s4 + $0x18] sm:$0xff]   ;;  %v2577_v22 = vld [vmem:[%s3611_s4 + $0x10] sm:$0xff]  }
 0x64a   :  { %v1786_v6 = vmul.f32 %v2268_v53, %v1774_v63  ;;  %v1787_v24 = vmul.f32 %v2268_v53, %v1775_v31  ;;  %v1788_v42 = vmul.f32 %v2268_v53, %v1776_v10  ;;  %v1793_v19 = vadd.f32 %v2269_v23, %v1781_v1  ;;  %v2578_v40 = vld [vmem:[%s3611_s4 + $0x8] sm:$0xff]   ;;  %v2579_v63 = vld [vmem:[%s3611_s4] sm:$0xff]  }
 0x64b   :  { %v1794_v54 = vadd.f32 %v2269_v23, %v1782_v56  ;;  %v1795_v0 = vadd.f32 %v2269_v23, %v1783_v55  ;;  %v1796_v61 = vadd.f32 %v2269_v23, %v1784_v43  ;;  %v1797_v46 = vadd.f32 %v2269_v23, %v1785_v33  ;;  %v2270_v31 = vld [vmem:[%s3616_s9] ss:$0 sm:$0xff] }
 0x64c   :  { %v1798_v12 = vadd.f32 %v2269_v23, %v1786_v6  ;;  %v1799_v50 = vadd.f32 %v2269_v23, %v1787_v24  ;;  %v1800_v26 = vadd.f32 %v2269_v23, %v1788_v42  ;;  %v1801_v36 = vpack.c.bf16 %v1793_v19, %v1793_v19  ;;  %v2574_v23 = vld [vmem:[%s3611_s4 + $0x28] sm:$0xff]  }
 0x64d   :  { %v1802_v16 = vpack.c.bf16 %v1794_v54, %v1794_v54  ;;  %v1803_v58 = vpack.c.bf16 %v1795_v0, %v1795_v0  ;;  %v1804_v9 = vpack.c.bf16 %v1796_v61, %v1796_v61  ;;  %v1805_v45 = vpack.c.bf16 %v1797_v46, %v1797_v46  ;;  %2505 = vmatpush3.bf16.msra.mxu1 %v2574_v23  ;;  %v2580_v0 = vld [vmem:[%s3612_s5 + $0x18] sm:$0xff]   ;;  %v2581_v61 = vld [vmem:[%s3612_s5 + $0x10] sm:$0xff]   ;;  %v2582_v46 = vld [vmem:[%s3612_s5 + $0x8] sm:$0xff]  }
 0x64e   :  { %v1806_v5 = vpack.c.bf16 %v1798_v12, %v1798_v12  ;;  %v1807_v2 = vpack.c.bf16 %v1799_v50, %v1799_v50  ;;  %v1808_v52 = vpack.c.bf16 %v1800_v26, %v1800_v26  ;;  %v1832_v60 = vunpack.c.l.b16 %v1801_v36  ;;  %2506 = vmatprep.subr.bf16.mxu1 %v2690_v48  ;;  %v2583_v12 = vld [vmem:[%s3612_s5] sm:$0xff]  }
 0x64f   :  { %v1833_v49 = vunpack.c.l.b16 %v1802_v16  ;;  %v1834_v7 = vunpack.c.l.b16 %v1803_v58  ;;  %v1835_v29 = vunpack.c.l.b16 %v1804_v9  ;;  %v1836_v4 = vunpack.c.l.b16 %v1805_v45  ;;  %v2276_v50 = vld [vmem:[%s3615_s8 + $0x4] ss:$0 sm:$0xff] }
 0x650   :  { %v1837_v14 = vunpack.c.l.b16 %v1806_v5  ;;  %v1838_v17 = vunpack.c.l.b16 %v1807_v2  ;;  %v1839_v41 = vunpack.c.l.b16 %v1808_v52 }
 0x651   :  { %v1840_v39 = vrot.slane %v1833_v49, 7  ;;  %v1842_v25 = vrot.slane %v1834_v7, 6  ;;  %v1844_v15 = vrot.slane %v1835_v29, 5  ;;  %v1846_v51 = vrot.slane %v1836_v4, 4  ;;  %2507 = vmatpush3.bf16.msra.mxu1 %v2575_v18 }
 0x652   :  { %v1848_v57 = vrot.slane %v1837_v14, 3  ;;  %v1850_v21 = vrot.slane %v1838_v17, 2  ;;  %v1852_v32 = vrot.slane %v1839_v41, 1  ;;  %2508 = vmatprep.subr.bf16.mxu1 %v2690_v48 }
 0x653   :  { %v1841_v62 = vsel %vm877_vm1, %v1840_v39, %v1832_v60 }
 0x654   :  { %v1843_v47 = vsel %vm880_vm2, %v1842_v25, %v1841_v62 }
 0x655   :  { %v1845_v53 = vsel %vm883_vm3, %v1844_v15, %v1843_v47  ;;  %2509 = vmatpush3.bf16.msra.mxu1 %v2576_v44 }
 0x656   :  { %v1847_v3 = vsel %vm886_vm4, %v1846_v51, %v1845_v53  ;;  %2510 = vmatprep.subr.bf16.mxu1 %v2690_v48 }
 0x657   :  { %v1849_v11 = vsel %vm889_vm5, %v1848_v57, %v1847_v3 }
 0x658   :  { %v1851_v13 = vsel %vm892_vm6, %v1850_v21, %v1849_v11 }
 0x659   :  { %v1853_v37 = vsel %vm895_vm7, %v1852_v32, %v1851_v13  ;;  %2511 = vmatpush3.bf16.msra.mxu1 %v2577_v22 }
 0x65a   :  { %v1854_v27 = vpack.c.b16 %v1853_v37, %v1853_v37  ;;  %2512 = vmatprep.subr.bf16.mxu1 %v2690_v48 }
 0x65c   :  { %2497 = vmatmul.mubr.msk.bf16.vlgmr.msra.gmra.mxu0 %vm177_vm0, %v1854_v27 }
 0x65d   :  { %2528 = vmatprep.mubr.msk.bf16.mxu0 %vm2691_vm8, %v2690_v48  ;;  %2513 = vmatpush3.bf16.msra.mxu1 %v2578_v40 }
 0x65e   :  { %2514 = vmatprep.subr.bf16.mxu1 %v2690_v48  ;;  %2521 = vmatpush3.bf16.msra.mxu0 %v2580_v0 }
 0x65f   :  { %2522 = vmatprep.subr.bf16.mxu0 %v2690_v48 }
 0x661   :  { %2515 = vmatpush3.bf16.msra.mxu1 %v2579_v63 }
 0x662   :  { %2523 = vmatpush3.bf16.msra.mxu0 %v2581_v61 }
 0x663   :  { %2524 = vmatprep.subr.bf16.mxu0 %v2690_v48 }
 0x666   :  { %2525 = vmatpush3.bf16.msra.mxu0 %v2582_v46 }
 0x667   :  { %2526 = vmatprep.subr.bf16.mxu0 %v2690_v48 }
 0x66a   :  { %2527 = vmatpush3.bf16.msra.mxu0 %v2583_v12 }
 0x71c   :  { %v1916_v10 = vpop.f32.mrf.mxu0 }
 0x71d   :  { %v1917_v1 = vadd.f32 %v2270_v31, %v1916_v10 }
 0x71e   :  { %v2498_v56 = vpop.f32.mrf.mxu0 }
 0x71f   :  { %v1923_v55 = vmul.f32 0.70710677, %v1917_v1  ;;  %v1922_v24 = vmul.f32 0.5, %v1917_v1 }
 0x720   :  { %v1919_v43 = vpop.f32.mrf.mxu0 }
 0x721   :  { %2666 = verf.f32 %v1923_v55  ;;  %v2285_v55 = vld [vmem:[%s3617_s10] ss:$0 sm:$0xff] }
 0x722   :  { %v2499_v33 = vpop.f32.mrf.mxu0 }
 0x72e   :  { %v2667_v6 = vpop.eup %2666 }
 0x72f   :  { %v1925_v42 = vadd.f32 1.0, %v2667_v6 }
 0x731   :  { %v1926_v19 = vmul.f32 %v1925_v42, %v1922_v24 }
 0x733   :  { %v1927_v54 = vpack.c.bf16 %v1926_v19, %v1926_v19 }
 0x735   :  { %2517 = vmatmul.mubr.bf16.vlgmr.msra.gmra.mxu1 %v1927_v54 }
 0x7f5   :  { %v2030_v26 = vpop.f32.mrf.mxu1 }
 0x7f6   :  { %v2031_v36 = vadd.f32 %v2276_v50, %v2030_v26 }
 0x7f7   :  { %v2518_v16 = vpop.f32.mrf.mxu1 }
 0x7f8   :  { %v2037_v58 = vrot.slane %v2031_v36, 1  ;;  %v2038_v9 = vrot.slane %v2031_v36, 2  ;;  %v2039_v45 = vrot.slane %v2031_v36, 3  ;;  %v2040_v5 = vrot.slane %v2031_v36, 4 }
 0x7f9   :  { %v2033_v2 = vpop.f32.mrf.mxu1  ;;  %v2041_v52 = vrot.slane %v2031_v36, 5  ;;  %v2042_v49 = vrot.slane %v2031_v36, 6  ;;  %v2043_v7 = vrot.slane %v2031_v36, 7  ;;  %v2052_v29 = vadd.f32 %v2031_v36, %v3418_v35 }
 0x7fa   :  { %v2053_v48 = vadd.f32 %v2037_v58, %v3406_v59  ;;  %v2054_v4 = vadd.f32 %v2038_v9, %v3409_v38  ;;  %v2055_v60 = vadd.f32 %v2039_v45, %v3412_v20  ;;  %v2056_v14 = vadd.f32 %v2040_v5, %v3415_v34 }
 0x7fb   :  { %v2519_v39 = vpop.f32.mrf.mxu1  ;;  %v2057_v25 = vadd.f32 %v2041_v52, %v3421_v8  ;;  %v2058_v17 = vadd.f32 %v2042_v49, %v3426_v28  ;;  %v2059_v41 = vadd.f32 %v2043_v7, %v3429_v30  ;;  %v2060_v62 = vpack.c.bf16 %v2052_v29, %v2052_v29 }
 0x7fc   :  { %v2061_v15 = vpack.c.bf16 %v2053_v48, %v2053_v48  ;;  %v2062_v47 = vpack.c.bf16 %v2054_v4, %v2054_v4  ;;  %v2063_v51 = vpack.c.bf16 %v2055_v60, %v2055_v60  ;;  %v2064_v35 = vpack.c.bf16 %v2056_v14, %v2056_v14 }
 0x7fd   :  { %v2065_v53 = vpack.c.bf16 %v2057_v25, %v2057_v25  ;;  %v2066_v59 = vpack.c.bf16 %v2058_v17, %v2058_v17  ;;  %v2067_v57 = vpack.c.bf16 %v2059_v41, %v2059_v41  ;;  %v2091_v34 = vunpack.c.l.b16 %v2060_v62 }
 0x7fe   :  { %v2092_v38 = vunpack.c.l.b16 %v2061_v15  ;;  %v2093_v3 = vunpack.c.l.b16 %v2062_v47  ;;  %v2094_v20 = vunpack.c.l.b16 %v2063_v51  ;;  %v2095_v21 = vunpack.c.l.b16 %v2064_v35 }
 0x7ff   :  { %v2096_v11 = vunpack.c.l.b16 %v2065_v53  ;;  %v2097_v13 = vunpack.c.l.b16 %v2066_v59  ;;  %v2098_v28 = vunpack.c.l.b16 %v2067_v57 }
 0x800   :  { %v2099_v32 = vrot.slane %v2092_v38, 7  ;;  %v2101_v8 = vrot.slane %v2093_v3, 6  ;;  %v2103_v37 = vrot.slane %v2094_v20, 5  ;;  %v2105_v23 = vrot.slane %v2095_v21, 4 }
 0x801   :  { %v2107_v44 = vrot.slane %v2096_v11, 3  ;;  %v2109_v40 = vrot.slane %v2097_v13, 2  ;;  %v2111_v31 = vrot.slane %v2098_v28, 1 }
 0x802   :  { %v2100_v30 = vsel %vm877_vm1, %v2099_v32, %v2091_v34 }
 0x803   :  { %v2102_v27 = vsel %vm880_vm2, %v2101_v8, %v2100_v30 }
 0x804   :  { %v2104_v18 = vsel %vm883_vm3, %v2103_v37, %v2102_v27 }
 0x805   :  { %v2106_v22 = vsel %vm886_vm4, %v2105_v23, %v2104_v18 }
 0x806   :  { %v2108_v63 = vsel %vm889_vm5, %v2107_v44, %v2106_v22 }
 0x807   :  { %v2110_v10 = vsel %vm892_vm6, %v2109_v40, %v2108_v63 }
 0x808   :  { %v2112_v1 = vsel %vm895_vm7, %v2111_v31, %v2110_v10 }
 0x809   :  { %v2113_v56 = vpack.c.b16 %v2112_v1, %v2112_v1 }
 0x80b   :  { %2529 = vmatmul.mubr.msk.bf16.vlgmr.msra.gmra.mxu0 %vm177_vm0, %v2113_v56 }
 0x8cb   :  { %v2175_v43 = vpop.f32.mrf.mxu0 }
 0x8cc   :  { %v2176_v33 = vadd.f32 %v2285_v55, %v2175_v43 }
 0x8cd   :  { %v2530_v6 = vpop.f32.mrf.mxu0 }
 0x8ce   :  { %2181 = vst [vmem:[#allocation2] sm:$0xff] %v2176_v33 }
 0x8cf   :  { %v2178_v24 = vpop.f32.mrf.mxu0 }
 0x8d0   :  { %2679 = shalt.err (!%p2676_p4)
}
 0x8d1   :  { %2191 = dma.vmem_to_hbm [thread:$0]  %s2189_s6, 128, %s3618_s11, [#allocation3]   ;;  %v2531_v42 = vpop.f32.mrf.mxu0 }
 0x8d2   :  { %2688 = dma.done.wait [#allocation3], 128  }
 0x8d3   :  { %2689 = vsyncadd [#allocation3], 4294967168 }
 0x8d4   :  { %2195 = vsyncpa [#allocation3], 1 }

</bundles_post_ra>
